<compile_context>
chip_gen: v6e
topology: v6e:2x2x1
jax: 0.10.0
libtpu: 0.0.40
codegen_flags: <defaults>
</compile_context>

<pallas_src>
import math

import jax
import jax.numpy as jnp
from jax import lax
from jax.experimental import pallas as pl
from jax.experimental.pallas import tpu as pltpu

HIDDEN = 1024
LN_EPS = 1e-5
LEAKY_SLOPE = 0.2


def _round_up(x, m):
    return ((x + m - 1) // m) * m


def _layernorm(v, gamma, beta):
    # v: (rows, N) f32, gamma/beta: (1, N) f32.
    # One-pass statistics: sum and sum-of-squares are independent XLU reductions.
    n = v.shape[-1]
    inv_n = 1.0 / n
    s = jnp.sum(v, axis=-1, keepdims=True)
    sq = jnp.sum(v * v, axis=-1, keepdims=True)
    mu = s * inv_n
    var = jnp.maximum(sq * inv_n - mu * mu, 0.0)
    return (v - mu) * lax.rsqrt(var + LN_EPS) * gamma + beta


def encoder_kernel(x_ref,
                   g0_ref, b0_ref,           # input_norm gamma/beta
                   w1_ref, bb1_ref,          # hidden Linear W (D_in, 1024) bf16, bias (1, 1024) f32
                   g1_ref, b1_ref,           # hidden LayerNorm gamma/beta
                   w2_ref, bb2_ref,          # output Linear W (1024, D_out) bf16, bias (1, D_out) f32
                   g2_ref, b2_ref,           # output LayerNorm gamma/beta
                   o_ref):
    x = x_ref[...].astype(jnp.float32)

    # input_norm (f32)
    xn = _layernorm(x, g0_ref[...], b0_ref[...])

    # hidden_layer: Linear (bf16 MXU, f32 accum) -> LayerNorm -> LeakyReLU(0.2)
    h = jnp.dot(xn.astype(jnp.bfloat16), w1_ref[...],
                preferred_element_type=jnp.float32) + bb1_ref[...]
    h = _layernorm(h, g1_ref[...], b1_ref[...])
    h = jnp.maximum(h, LEAKY_SLOPE * h)       # leaky relu, slope < 1

    # output_layer: Linear (bf16 MXU, f32 accum) -> LayerNorm
    o = jnp.dot(h.astype(jnp.bfloat16), w2_ref[...],
                preferred_element_type=jnp.float32) + bb2_ref[...]
    o = _layernorm(o, g2_ref[...], b2_ref[...])

    o_ref[...] = o.astype(o_ref.dtype)


def encoder_only(x, params, *, tile_b=256):
    B, D_in = x.shape
    D_out = params["w2"].shape[1]

    # --- choose the batch tile -------------------------------------------------
    # Keep tile_b a multiple of 8 (sublane), cap it so (a) it never exceeds the
    # (padded) batch and (b) the grid has >= 2 steps when the batch allows, so the
    # batch axis can shard across the 2 TensorCores of a v7x chip.
    tile_b = max(8, (tile_b // 8) * 8)
    tile_b = min(tile_b, _round_up(-(-B // 2), 8), _round_up(B, 8))
    B_pad = _round_up(B, tile_b)
    if B_pad != B:
        x = jnp.pad(x, ((0, B_pad - B), (0, 0)))
    grid = (B_pad // tile_b,)

    # TODO(synk): if D_in / D_out are not multiples of 128, stores/loads become
    # masked (lane-sparse); padding the feature dims would require masking inside
    # the LayerNorm reductions, so it is intentionally not done here.

    row_spec = lambda n: pl.BlockSpec((1, n), lambda i: (0, 0))

    param_list = (params["g0"], params["b0"],
                  params["w1"], params["bias1"],
                  params["g1"], params["b1"],
                  params["w2"], params["bias2"],
                  params["g2"], params["b2"])
    nbytes = lambda a: a.size * a.dtype.itemsize
    cost = pl.CostEstimate(
        flops=2 * B_pad * (D_in * HIDDEN + HIDDEN * D_out),
        transcendentals=0,
        bytes_accessed=nbytes(x) + sum(nbytes(p) for p in param_list)
        + B_pad * D_out * x.dtype.itemsize,
    )

    out = pl.pallas_call(
        encoder_kernel,
        out_shape=jax.ShapeDtypeStruct((B_pad, D_out), x.dtype),
        grid_spec=pltpu.PrefetchScalarGridSpec(
            num_scalar_prefetch=0,
            grid=grid,
            in_specs=[
                pl.BlockSpec((tile_b, D_in), lambda i: (i, 0)),    # x
                row_spec(D_in), row_spec(D_in),                    # g0, b0
                pl.BlockSpec((D_in, HIDDEN), lambda i: (0, 0)),    # w1 (bf16, grid-invariant)
                row_spec(HIDDEN),                                  # bias1
                row_spec(HIDDEN), row_spec(HIDDEN),                # g1, b1
                pl.BlockSpec((HIDDEN, D_out), lambda i: (0, 0)),   # w2 (bf16, grid-invariant)
                row_spec(D_out),                                   # bias2
                row_spec(D_out), row_spec(D_out),                  # g2, b2
            ],
            out_specs=pl.BlockSpec((tile_b, D_out), lambda i: (i, 0)),
        ),
        compiler_params=pltpu.CompilerParams(
            dimension_semantics=("parallel",),
            vmem_limit_bytes=64 * 1024 * 1024,   # safe on v5e/v6e/v7x
        ),
        cost_estimate=cost,
    )(x, *param_list)

    return out[:B]


def init_params(key, d_in, d_out):
    """Matches PyTorch init: kaiming_normal_(fan_in, nonlinearity='leaky_relu')
    for Linear weights (a=0 default -> gain=sqrt(2)), zeros for Linear biases,
    ones/zeros for LayerNorm gamma/beta.  Weights stored pre-transposed and in
    bf16 for the MXU; everything else stays f32."""
    k1, k2 = jax.random.split(key)
    gain = math.sqrt(2.0)

    # PyTorch Linear weight is (out, in); we store the transposed (in, out).
    std1 = gain / math.sqrt(d_in)
    w1 = (jax.random.normal(k1, (HIDDEN, d_in), jnp.float32) * std1).T
    std2 = gain / math.sqrt(HIDDEN)
    w2 = (jax.random.normal(k2, (d_out, HIDDEN), jnp.float32) * std2).T

    return {
        "g0": jnp.ones((1, d_in), jnp.float32),
        "b0": jnp.zeros((1, d_in), jnp.float32),
        "w1": jnp.asarray(w1, jnp.bfloat16),
        "bias1": jnp.zeros((1, HIDDEN), jnp.float32),
        "g1": jnp.ones((1, HIDDEN), jnp.float32),
        "b1": jnp.zeros((1, HIDDEN), jnp.float32),
        "w2": jnp.asarray(w2, jnp.bfloat16),
        "bias2": jnp.zeros((1, d_out), jnp.float32),
        "g2": jnp.ones((1, d_out), jnp.float32),
        "b2": jnp.zeros((1, d_out), jnp.float32),
    }


def encoder_ref(x, p, *, mxu_dtype=jnp.bfloat16):
    """Pure-JAX reference. With mxu_dtype=bf16 it mirrors the kernel's matmul
    precision (tight check); with f32 it is the 'ideal' full-precision model."""
    def ln(v, g, b):
        mu = jnp.mean(v, axis=-1, keepdims=True)
        var = jnp.mean(jnp.square(v - mu), axis=-1, keepdims=True)
        return (v - mu) / jnp.sqrt(var + LN_EPS) * g + b

    def mm(a, w):
        return jnp.dot(a.astype(mxu_dtype), w.astype(mxu_dtype),
                       preferred_element_type=jnp.float32)

    xn = ln(x.astype(jnp.float32), p["g0"], p["b0"])
    h = mm(xn, p["w1"]) + p["bias1"]
    h = ln(h, p["g1"], p["b1"])
    h = jnp.where(h >= 0, h, LEAKY_SLOPE * h)
    o = mm(h, p["w2"]) + p["bias2"]
    return ln(o, p["g2"], p["b2"])


if __name__ == "__main__":
    key = jax.random.PRNGKey(0)
    kx, kp = jax.random.split(key)

    B, D_IN, D_OUT = 8, 256, 128
    x = jax.random.normal(kx, (B, D_IN), jnp.float32)
    params = init_params(kp, D_IN, D_OUT)

    out = jax.block_until_ready(encoder_only(x, params))
    assert out.shape == (B, D_OUT)

    # Tight check against a reference with the same (bf16 MXU, f32 accum) precision.
    ref_bf16 = encoder_ref(x, params, mxu_dtype=jnp.bfloat16)
    assert jnp.allclose(out, ref_bf16, atol=1e-4, rtol=1e-4), "mismatch vs bf16-matmul reference"

    # Loose check against the full-f32 ideal (bf16 rounding is the only difference).
    ref_f32 = encoder_ref(x, params, mxu_dtype=jnp.float32)
    assert jnp.allclose(out, ref_f32, atol=3e-2, rtol=3e-2), "mismatch vs f32 reference"

    print("KERNEL_OK")
</pallas_src>

<mosaic_0001>
module attributes {stable_mosaic.version = 11 : i64} {
  func.func @encoder_kernel(%arg0: i32, %arg1: memref<8x256xf32, #tpu.memory_space<vmem>>, %arg2: memref<1x256xf32, #tpu.memory_space<vmem>>, %arg3: memref<1x256xf32, #tpu.memory_space<vmem>>, %arg4: memref<256x1024xbf16, #tpu.memory_space<vmem>>, %arg5: memref<1x1024xf32, #tpu.memory_space<vmem>>, %arg6: memref<1x1024xf32, #tpu.memory_space<vmem>>, %arg7: memref<1x1024xf32, #tpu.memory_space<vmem>>, %arg8: memref<1024x128xbf16, #tpu.memory_space<vmem>>, %arg9: memref<1x128xf32, #tpu.memory_space<vmem>>, %arg10: memref<1x128xf32, #tpu.memory_space<vmem>>, %arg11: memref<1x128xf32, #tpu.memory_space<vmem>>, %arg12: memref<8x128xf32, #tpu.memory_space<vmem>>) attributes {dimension_semantics = [#tpu.dimension_semantics<parallel>], iteration_bounds = array<i64: 1>, scalar_prefetch = 0 : i64, scratch_operands = 0 : i64, tpu.core_type = #tpu.core_type<tc>, window_params = [{transform_indices = @transform_0, window_bounds = array<i64: 8, 256>}, {pipeline_mode = #tpu.pipeline_mode<synchronous>, transform_indices = @transform_1, window_bounds = array<i64: 1, 256>}, {pipeline_mode = #tpu.pipeline_mode<synchronous>, transform_indices = @transform_2, window_bounds = array<i64: 1, 256>}, {pipeline_mode = #tpu.pipeline_mode<synchronous>, transform_indices = @transform_3, window_bounds = array<i64: 256, 1024>}, {pipeline_mode = #tpu.pipeline_mode<synchronous>, transform_indices = @transform_4, window_bounds = array<i64: 1, 1024>}, {pipeline_mode = #tpu.pipeline_mode<synchronous>, transform_indices = @transform_5, window_bounds = array<i64: 1, 1024>}, {pipeline_mode = #tpu.pipeline_mode<synchronous>, transform_indices = @transform_6, window_bounds = array<i64: 1, 1024>}, {pipeline_mode = #tpu.pipeline_mode<synchronous>, transform_indices = @transform_7, window_bounds = array<i64: 1024, 128>}, {pipeline_mode = #tpu.pipeline_mode<synchronous>, transform_indices = @transform_8, window_bounds = array<i64: 1, 128>}, {pipeline_mode = #tpu.pipeline_mode<synchronous>, transform_indices = @transform_9, window_bounds = array<i64: 1, 128>}, {pipeline_mode = #tpu.pipeline_mode<synchronous>, transform_indices = @transform_10, window_bounds = array<i64: 1, 128>}, {transform_indices = @transform_11, window_bounds = array<i64: 8, 128>}]} {
    %c0 = arith.constant 0 : index
    %c0_0 = arith.constant 0 : index
    %0 = vector.load %arg1[%c0, %c0_0] : memref<8x256xf32, #tpu.memory_space<vmem>>, vector<8x256xf32>
    %c0_1 = arith.constant 0 : index
    %c0_2 = arith.constant 0 : index
    %1 = vector.load %arg2[%c0_1, %c0_2] : memref<1x256xf32, #tpu.memory_space<vmem>>, vector<1x256xf32>
    %c0_3 = arith.constant 0 : index
    %c0_4 = arith.constant 0 : index
    %2 = vector.load %arg3[%c0_3, %c0_4] : memref<1x256xf32, #tpu.memory_space<vmem>>, vector<1x256xf32>
    %cst = arith.constant dense<0.000000e+00> : vector<8xf32>
    %3 = vector.multi_reduction <add>, %0, %cst [1] : vector<8x256xf32> to vector<8xf32>
    %4 = vector.shape_cast %3 : vector<8xf32> to vector<8x1xf32>
    %5 = arith.mulf %0, %0 : vector<8x256xf32>
    %cst_5 = arith.constant dense<0.000000e+00> : vector<8xf32>
    %6 = vector.multi_reduction <add>, %5, %cst_5 [1] : vector<8x256xf32> to vector<8xf32>
    %7 = vector.shape_cast %6 : vector<8xf32> to vector<8x1xf32>
    %cst_6 = arith.constant 3.906250e-03 : f32
    %8 = vector.broadcast %cst_6 : f32 to vector<8x1xf32>
    %9 = arith.mulf %4, %8 : vector<8x1xf32>
    %cst_7 = arith.constant 3.906250e-03 : f32
    %10 = vector.broadcast %cst_7 : f32 to vector<8x1xf32>
    %11 = arith.mulf %7, %10 : vector<8x1xf32>
    %12 = arith.mulf %9, %9 : vector<8x1xf32>
    %13 = arith.subf %11, %12 : vector<8x1xf32>
    %cst_8 = arith.constant 0.000000e+00 : f32
    %14 = vector.broadcast %cst_8 : f32 to vector<8x1xf32>
    %15 = arith.maximumf %13, %14 : vector<8x1xf32>
    %16 = vector.broadcast %9 : vector<8x1xf32> to vector<8x256xf32>
    %17 = arith.subf %0, %16 : vector<8x256xf32>
    %cst_9 = arith.constant 9.99999974E-6 : f32
    %18 = vector.broadcast %cst_9 : f32 to vector<8x1xf32>
    %19 = arith.addf %15, %18 : vector<8x1xf32>
    %20 = math.rsqrt %19 : vector<8x1xf32>
    %21 = vector.broadcast %20 : vector<8x1xf32> to vector<8x256xf32>
    %22 = arith.mulf %17, %21 : vector<8x256xf32>
    %23 = vector.broadcast %1 : vector<1x256xf32> to vector<8x256xf32>
    %24 = arith.mulf %22, %23 : vector<8x256xf32>
    %25 = vector.broadcast %2 : vector<1x256xf32> to vector<8x256xf32>
    %26 = arith.addf %24, %25 : vector<8x256xf32>
    %27 = arith.truncf %26 : vector<8x256xf32> to vector<8x256xbf16>
    %c0_10 = arith.constant 0 : index
    %c0_11 = arith.constant 0 : index
    %28 = vector.load %arg4[%c0_10, %c0_11] : memref<256x1024xbf16, #tpu.memory_space<vmem>>, vector<256x1024xbf16>
    %cst_12 = arith.constant dense<0.000000e+00> : vector<8x1024xf32>
    %29 = tpu.matmul %27, %28, %cst_12 {dimension_numbers = #tpu.dot_dimension_numbers<[1], [0], [0], [1], [0, 0, 1, 1], [], []>} : vector<8x256xbf16>, vector<256x1024xbf16>, vector<8x1024xf32> -> vector<8x1024xf32>
    %c0_13 = arith.constant 0 : index
    %c0_14 = arith.constant 0 : index
    %30 = vector.load %arg5[%c0_13, %c0_14] : memref<1x1024xf32, #tpu.memory_space<vmem>>, vector<1x1024xf32>
    %31 = vector.broadcast %30 : vector<1x1024xf32> to vector<8x1024xf32>
    %32 = arith.addf %29, %31 : vector<8x1024xf32>
    %c0_15 = arith.constant 0 : index
    %c0_16 = arith.constant 0 : index
    %33 = vector.load %arg6[%c0_15, %c0_16] : memref<1x1024xf32, #tpu.memory_space<vmem>>, vector<1x1024xf32>
    %c0_17 = arith.constant 0 : index
    %c0_18 = arith.constant 0 : index
    %34 = vector.load %arg7[%c0_17, %c0_18] : memref<1x1024xf32, #tpu.memory_space<vmem>>, vector<1x1024xf32>
    %cst_19 = arith.constant dense<0.000000e+00> : vector<8xf32>
    %35 = vector.multi_reduction <add>, %32, %cst_19 [1] : vector<8x1024xf32> to vector<8xf32>
    %36 = vector.shape_cast %35 : vector<8xf32> to vector<8x1xf32>
    %37 = arith.mulf %32, %32 : vector<8x1024xf32>
    %cst_20 = arith.constant dense<0.000000e+00> : vector<8xf32>
    %38 = vector.multi_reduction <add>, %37, %cst_20 [1] : vector<8x1024xf32> to vector<8xf32>
    %39 = vector.shape_cast %38 : vector<8xf32> to vector<8x1xf32>
    %cst_21 = arith.constant 9.765625E-4 : f32
    %40 = vector.broadcast %cst_21 : f32 to vector<8x1xf32>
    %41 = arith.mulf %36, %40 : vector<8x1xf32>
    %cst_22 = arith.constant 9.765625E-4 : f32
    %42 = vector.broadcast %cst_22 : f32 to vector<8x1xf32>
    %43 = arith.mulf %39, %42 : vector<8x1xf32>
    %44 = arith.mulf %41, %41 : vector<8x1xf32>
    %45 = arith.subf %43, %44 : vector<8x1xf32>
    %cst_23 = arith.constant 0.000000e+00 : f32
    %46 = vector.broadcast %cst_23 : f32 to vector<8x1xf32>
    %47 = arith.maximumf %45, %46 : vector<8x1xf32>
    %48 = vector.broadcast %41 : vector<8x1xf32> to vector<8x1024xf32>
    %49 = arith.subf %32, %48 : vector<8x1024xf32>
    %cst_24 = arith.constant 9.99999974E-6 : f32
    %50 = vector.broadcast %cst_24 : f32 to vector<8x1xf32>
    %51 = arith.addf %47, %50 : vector<8x1xf32>
    %52 = math.rsqrt %51 : vector<8x1xf32>
    %53 = vector.broadcast %52 : vector<8x1xf32> to vector<8x1024xf32>
    %54 = arith.mulf %49, %53 : vector<8x1024xf32>
    %55 = vector.broadcast %33 : vector<1x1024xf32> to vector<8x1024xf32>
    %56 = arith.mulf %54, %55 : vector<8x1024xf32>
    %57 = vector.broadcast %34 : vector<1x1024xf32> to vector<8x1024xf32>
    %58 = arith.addf %56, %57 : vector<8x1024xf32>
    %cst_25 = arith.constant 2.000000e-01 : f32
    %59 = vector.broadcast %cst_25 : f32 to vector<8x1024xf32>
    %60 = arith.mulf %59, %58 : vector<8x1024xf32>
    %61 = arith.maximumf %58, %60 : vector<8x1024xf32>
    %62 = arith.truncf %61 : vector<8x1024xf32> to vector<8x1024xbf16>
    %c0_26 = arith.constant 0 : index
    %c0_27 = arith.constant 0 : index
    %63 = vector.load %arg8[%c0_26, %c0_27] : memref<1024x128xbf16, #tpu.memory_space<vmem>>, vector<1024x128xbf16>
    %cst_28 = arith.constant dense<0.000000e+00> : vector<8x128xf32>
    %64 = tpu.matmul %62, %63, %cst_28 {dimension_numbers = #tpu.dot_dimension_numbers<[1], [0], [0], [1], [0, 0, 1, 1], [], []>} : vector<8x1024xbf16>, vector<1024x128xbf16>, vector<8x128xf32> -> vector<8x128xf32>
    %c0_29 = arith.constant 0 : index
    %c0_30 = arith.constant 0 : index
    %65 = vector.load %arg9[%c0_29, %c0_30] : memref<1x128xf32, #tpu.memory_space<vmem>>, vector<1x128xf32>
    %66 = vector.broadcast %65 : vector<1x128xf32> to vector<8x128xf32>
    %67 = arith.addf %64, %66 : vector<8x128xf32>
    %c0_31 = arith.constant 0 : index
    %c0_32 = arith.constant 0 : index
    %68 = vector.load %arg10[%c0_31, %c0_32] : memref<1x128xf32, #tpu.memory_space<vmem>>, vector<1x128xf32>
    %c0_33 = arith.constant 0 : index
    %c0_34 = arith.constant 0 : index
    %69 = vector.load %arg11[%c0_33, %c0_34] : memref<1x128xf32, #tpu.memory_space<vmem>>, vector<1x128xf32>
    %cst_35 = arith.constant dense<0.000000e+00> : vector<8xf32>
    %70 = vector.multi_reduction <add>, %67, %cst_35 [1] : vector<8x128xf32> to vector<8xf32>
    %71 = vector.shape_cast %70 : vector<8xf32> to vector<8x1xf32>
    %72 = arith.mulf %67, %67 : vector<8x128xf32>
    %cst_36 = arith.constant dense<0.000000e+00> : vector<8xf32>
    %73 = vector.multi_reduction <add>, %72, %cst_36 [1] : vector<8x128xf32> to vector<8xf32>
    %74 = vector.shape_cast %73 : vector<8xf32> to vector<8x1xf32>
    %cst_37 = arith.constant 7.812500e-03 : f32
    %75 = vector.broadcast %cst_37 : f32 to vector<8x1xf32>
    %76 = arith.mulf %71, %75 : vector<8x1xf32>
    %cst_38 = arith.constant 7.812500e-03 : f32
    %77 = vector.broadcast %cst_38 : f32 to vector<8x1xf32>
    %78 = arith.mulf %74, %77 : vector<8x1xf32>
    %79 = arith.mulf %76, %76 : vector<8x1xf32>
    %80 = arith.subf %78, %79 : vector<8x1xf32>
    %cst_39 = arith.constant 0.000000e+00 : f32
    %81 = vector.broadcast %cst_39 : f32 to vector<8x1xf32>
    %82 = arith.maximumf %80, %81 : vector<8x1xf32>
    %83 = vector.broadcast %76 : vector<8x1xf32> to vector<8x128xf32>
    %84 = arith.subf %67, %83 : vector<8x128xf32>
    %cst_40 = arith.constant 9.99999974E-6 : f32
    %85 = vector.broadcast %cst_40 : f32 to vector<8x1xf32>
    %86 = arith.addf %82, %85 : vector<8x1xf32>
    %87 = math.rsqrt %86 : vector<8x1xf32>
    %88 = vector.broadcast %87 : vector<8x1xf32> to vector<8x128xf32>
    %89 = arith.mulf %84, %88 : vector<8x128xf32>
    %90 = vector.broadcast %68 : vector<1x128xf32> to vector<8x128xf32>
    %91 = arith.mulf %89, %90 : vector<8x128xf32>
    %92 = vector.broadcast %69 : vector<1x128xf32> to vector<8x128xf32>
    %93 = arith.addf %91, %92 : vector<8x128xf32>
    %c0_41 = arith.constant 0 : index
    %c0_42 = arith.constant 0 : index
    %94 = vector.load %arg12[%c0_41, %c0_42] : memref<8x128xf32, #tpu.memory_space<vmem>>, vector<8x128xf32>
    tpu.vector_store %arg12[%c0_41, %c0_42], %93 {strides = array<i32>} : memref<8x128xf32, #tpu.memory_space<vmem>>, vector<8x128xf32>,
    return
  }
  func.func @transform_0(%arg0: i32) -> (i32, i32) {
    %c0_i32 = arith.constant 0 : i32
    %c0_i32_0 = arith.constant 0 : i32
    return %arg0, %c0_i32 : i32, i32
  }
  func.func @transform_1(%arg0: i32) -> (i32, i32) {
    %c0_i32 = arith.constant 0 : i32
    %c0_i32_0 = arith.constant 0 : i32
    %c0_i32_1 = arith.constant 0 : i32
    return %c0_i32, %c0_i32_0 : i32, i32
  }
  func.func @transform_2(%arg0: i32) -> (i32, i32) {
    %c0_i32 = arith.constant 0 : i32
    %c0_i32_0 = arith.constant 0 : i32
    %c0_i32_1 = arith.constant 0 : i32
    return %c0_i32, %c0_i32_0 : i32, i32
  }
  func.func @transform_3(%arg0: i32) -> (i32, i32) {
    %c0_i32 = arith.constant 0 : i32
    %c0_i32_0 = arith.constant 0 : i32
    %c0_i32_1 = arith.constant 0 : i32
    return %c0_i32, %c0_i32_0 : i32, i32
  }
  func.func @transform_4(%arg0: i32) -> (i32, i32) {
    %c0_i32 = arith.constant 0 : i32
    %c0_i32_0 = arith.constant 0 : i32
    %c0_i32_1 = arith.constant 0 : i32
    return %c0_i32, %c0_i32_0 : i32, i32
  }
  func.func @transform_5(%arg0: i32) -> (i32, i32) {
    %c0_i32 = arith.constant 0 : i32
    %c0_i32_0 = arith.constant 0 : i32
    %c0_i32_1 = arith.constant 0 : i32
    return %c0_i32, %c0_i32_0 : i32, i32
  }
  func.func @transform_6(%arg0: i32) -> (i32, i32) {
    %c0_i32 = arith.constant 0 : i32
    %c0_i32_0 = arith.constant 0 : i32
    %c0_i32_1 = arith.constant 0 : i32
    return %c0_i32, %c0_i32_0 : i32, i32
  }
  func.func @transform_7(%arg0: i32) -> (i32, i32) {
    %c0_i32 = arith.constant 0 : i32
    %c0_i32_0 = arith.constant 0 : i32
    %c0_i32_1 = arith.constant 0 : i32
    return %c0_i32, %c0_i32_0 : i32, i32
  }
  func.func @transform_8(%arg0: i32) -> (i32, i32) {
    %c0_i32 = arith.constant 0 : i32
    %c0_i32_0 = arith.constant 0 : i32
    %c0_i32_1 = arith.constant 0 : i32
    return %c0_i32, %c0_i32_0 : i32, i32
  }
  func.func @transform_9(%arg0: i32) -> (i32, i32) {
    %c0_i32 = arith.constant 0 : i32
    %c0_i32_0 = arith.constant 0 : i32
    %c0_i32_1 = arith.constant 0 : i32
    return %c0_i32, %c0_i32_0 : i32, i32
  }
  func.func @transform_10(%arg0: i32) -> (i32, i32) {
    %c0_i32 = arith.constant 0 : i32
    %c0_i32_0 = arith.constant 0 : i32
    %c0_i32_1 = arith.constant 0 : i32
    return %c0_i32, %c0_i32_0 : i32, i32
  }
  func.func @transform_11(%arg0: i32) -> (i32, i32) {
    %c0_i32 = arith.constant 0 : i32
    %c0_i32_0 = arith.constant 0 : i32
    return %arg0, %c0_i32 : i32, i32
  }
}

</mosaic_0001>

<bundles_post_ra>
// kernel: tpu_custom_call.1
= control target key start
LH: loop header
LB: loop body
LE: loop exit
PB: predicated region body
PF: predicated region fallthrough
CT: control target
= control target key end

     0   :  { %16 = vsyncpa [#allocation3], 0  ;;  %s2878_s0 = inlined_call_operand.hbm [shape: f32[8,256], index: 0, kind: input, shape index: {}]   ;;  %s2879_s1 = inlined_call_operand.hbm [shape: f32[1,256], index: 1, kind: input, shape index: {}]   ;;  %s2880_s2 = inlined_call_operand.hbm [shape: f32[1,256], index: 2, kind: input, shape index: {}]   ;;  %s2881_s3 = inlined_call_operand.hbm [shape: bf16[256,1024], index: 3, kind: input, shape index: {}]   ;;  %s2882_s4 = inlined_call_operand.hbm [shape: f32[1,1024], index: 4, kind: input, shape index: {}]   ;;  %s2883_s5 = inlined_call_operand.vmem [shape: f32[1,1024], index: 5, kind: input, shape index: {}]   ;;  %s2884_s6 = inlined_call_operand.hbm [shape: f32[1,1024], index: 6, kind: input, shape index: {}]   ;;  %s2885_s7 = inlined_call_operand.hbm [shape: bf16[1024,128], index: 7, kind: input, shape index: {}]   ;;  %s2886_s8 = inlined_call_operand.vmem [shape: f32[1,128], index: 8, kind: input, shape index: {}]   ;;  %s2887_s9 = inlined_call_operand.vmem [shape: f32[1,128], index: 9, kind: input, shape index: {}]   ;;  %s2888_s10 = inlined_call_operand.vmem [shape: f32[1,128], index: 10, kind: input, shape index: {}]   ;;  %s2889_s11 = inlined_call_operand.hbm [shape: f32[8,128], index: 11, kind: output, shape index: {}]  }
   0x1   :  { %17 = vsyncpa [#allocation6], 0 }
   0x2   :  { %18 = vsyncpa [#allocation9], 0 }
   0x3   :  { %19 = vsyncpa [#allocation12], 0 }
   0x4   :  { %20 = vsyncpa [#allocation4], 0  ;;  %s2586_s17 = smov [#allocation5]   ;;  %s2587_s19 = smov [#allocation8]  }
   0x5   :  { %s37_s18 = sshll.u32 %s2586_s17, 4  ;;  %s56_s20 = sshll.u32 %s2587_s19, 4  ;;  %s38_s18 = int_to_ptr.vmem [resolvable:$true] %s37_s18  ;;  %s57_s20 = int_to_ptr.vmem [resolvable:$true] %s56_s20 }
   0x6   :  { %s2424_s21 = scalar_lea.vmem %s38_s18, 32  ;;  %p2429_p1 = scmp.lt.s32.totalorder %s38_s18, %s38_s18 }
   0x7   :  { %p2425_p0 = scmp.ne.s32.totalorder %s38_s18, %s2424_s21  ;;  %p2430_p2 = scmp.lt.s32.totalorder %s2424_s21, %s2424_s21 }
   0x9   :  { %p2431_p3 = por %p2430_p2, %p2429_p1 }
   0xb   :  { %p2432_p4 = pnand %p2431_p3, %p2425_p0 }
   0xd   :  { %2435 = shalt.err (!%p2432_p4)
}
   0xe   :  { %40 = dma.hbm_to_vmem [thread:$0]  %s2879_s1, 32, %s38_s18, [#allocation6]  }
   0xf   :  { %s2444_s24 = scalar_lea.vmem %s57_s20, 16384  ;;  %p2449_p6 = scmp.lt.s32.totalorder %s57_s20, %s57_s20 }
  0x10   :  { %p2445_p5 = scmp.ne.s32.totalorder %s57_s20, %s2444_s24  ;;  %p2450_p7 = scmp.lt.s32.totalorder %s2444_s24, %s2444_s24 }
  0x12   :  { %p2451_p8 = por %p2450_p7, %p2449_p6 }
  0x14   :  { %p2452_p9 = pnand %p2451_p8, %p2445_p5 }
  0x16   :  { %2455 = shalt.err (!%p2452_p9)
}
  0x17   :  { %s2588_s25 = smov 512   ;;  %s2589_s26 = smov 32  }
  0x18   :  { %62 = dma.hbm_to_vmem [thread:$0]  %s2881_s3, 16384, %s57_s20, [#allocation9], %s2588_s25, %s2588_s25, %s2589_s26  }
  0x19   :  { %s2590_s29 = smov [#allocation11]   ;;  %s2591_s12 = smov [#allocation2]  }
  0x1a   :  { %s81_s30 = sshll.u32 %s2590_s29, 4  ;;  %s27_s13 = sshll.u32 %s2591_s12, 4  ;;  %s82_s30 = int_to_ptr.vmem [resolvable:$true] %s81_s30  ;;  %s28_s13 = int_to_ptr.vmem [resolvable:$true] %s27_s13 }
  0x1b   :  { %s2464_s1 = scalar_lea.vmem %s82_s30, 128  ;;  %p2469_p11 = scmp.lt.s32.totalorder %s82_s30, %s82_s30 }
  0x1c   :  { %p2465_p10 = scmp.ne.s32.totalorder %s82_s30, %s2464_s1  ;;  %p2470_p12 = scmp.lt.s32.totalorder %s2464_s1, %s2464_s1 }
  0x1e   :  { %p2471_p13 = por %p2470_p12, %p2469_p11 }
  0x20   :  { %p2472_p0 = pnand %p2471_p13, %p2465_p10 }
  0x22   :  { %2475 = shalt.err (!%p2472_p0)
}
  0x23   :  { %84 = dma.hbm_to_vmem [thread:$0]  %s2884_s6, 128, %s82_s30, [#allocation12]  }
  0x24   :  { %s2484_s16 = scalar_lea.vmem %s28_s13, 256  ;;  %p2489_p2 = scmp.lt.s32.totalorder %s28_s13, %s28_s13 }
  0x25   :  { %p2485_p1 = scmp.ne.s32.totalorder %s28_s13, %s2484_s16  ;;  %p2490_p3 = scmp.lt.s32.totalorder %s2484_s16, %s2484_s16 }
  0x27   :  { %p2491_p4 = por %p2490_p3, %p2489_p2 }
  0x29   :  { %p2492_p5 = pnand %p2491_p4, %p2485_p1 }
  0x2b   :  { %2495 = shalt.err (!%p2492_p5)
}
  0x2c   :  { %30 = dma.hbm_to_vmem [thread:$0]  %s2878_s0, 256, %s28_s13, [#allocation3]  }
  0x2d   :  { %s2592_s18 = smov [#allocation7]   ;;  %s2593_s20 = smov [#allocation10]  }
  0x2e   :  { %s47_s19 = sshll.u32 %s2592_s18, 4  ;;  %s69_s21 = sshll.u32 %s2593_s20, 4  ;;  %s48_s19 = int_to_ptr.vmem [resolvable:$true] %s47_s19  ;;  %s70_s21 = int_to_ptr.vmem [resolvable:$true] %s69_s21 }
  0x2f   :  { %s2504_s22 = scalar_lea.vmem %s48_s19, 32  ;;  %p2509_p7 = scmp.lt.s32.totalorder %s48_s19, %s48_s19 }
  0x30   :  { %p2505_p6 = scmp.ne.s32.totalorder %s48_s19, %s2504_s22  ;;  %p2510_p8 = scmp.lt.s32.totalorder %s2504_s22, %s2504_s22 }
  0x32   :  { %p2511_p9 = por %p2510_p8, %p2509_p7 }
  0x34   :  { %p2512_p10 = pnand %p2511_p9, %p2505_p6 }
  0x36   :  { %2515 = shalt.err (!%p2512_p10)
}
  0x37   :  { %50 = dma.hbm_to_vmem [thread:$0]  %s2880_s2, 32, %s48_s19, [#allocation6]  }
  0x38   :  { %s2524_s24 = scalar_lea.vmem %s70_s21, 128  ;;  %p2529_p12 = scmp.lt.s32.totalorder %s70_s21, %s70_s21 }
  0x39   :  { %p2525_p11 = scmp.ne.s32.totalorder %s70_s21, %s2524_s24  ;;  %p2530_p13 = scmp.lt.s32.totalorder %s2524_s24, %s2524_s24 }
  0x3b   :  { %p2531_p0 = por %p2530_p13, %p2529_p12 }
  0x3d   :  { %p2532_p1 = pnand %p2531_p0, %p2525_p11 }
  0x3f   :  { %2535 = shalt.err (!%p2532_p1)
}
  0x40   :  { %72 = dma.hbm_to_vmem [thread:$0]  %s2882_s4, 128, %s70_s21, [#allocation9]  }
  0x41   :  { %s2594_s26 = smov [#allocation13]  }
  0x42   :  { %s90_s27 = sshll.u32 %s2594_s26, 4  ;;  %s91_s27 = int_to_ptr.vmem [resolvable:$true] %s90_s27 }
  0x43   :  { %s2544_s28 = scalar_lea.vmem %s91_s27, 8192  ;;  %p2549_p3 = scmp.lt.s32.totalorder %s91_s27, %s91_s27 }
  0x44   :  { %p2545_p2 = scmp.ne.s32.totalorder %s91_s27, %s2544_s28  ;;  %p2550_p4 = scmp.lt.s32.totalorder %s2544_s28, %s2544_s28 }
  0x46   :  { %p2551_p5 = por %p2550_p4, %p2549_p3 }
  0x48   :  { %p2552_p6 = pnand %p2551_p5, %p2545_p2 }
  0x4a   :  { %2555 = shalt.err (!%p2552_p6)
}
  0x4b   :  { %s2595_s2 = smov 64   ;;  %s2596_s29 = smov 4  }
  0x4c   :  { %96 = dma.hbm_to_vmem [thread:$0]  %s2885_s7, 8192, %s91_s27, [#allocation12], %s2595_s2, %s2595_s2, %s2596_s29  }
  0x4d   :  { %2576 = dma.done.wait [#allocation3], 256  }
  0x4e   :  { %2577 = vsyncadd [#allocation3], 4294967040 }
  0x4f   :  { %2578 = dma.done.wait [#allocation6], 64  }
  0x50   :  { %2579 = vsyncadd [#allocation6], 4294967232 }
  0x51   :  { %2580 = dma.done.wait [#allocation9], 16512  }
  0x52   :  { %2581 = vsyncadd [#allocation9], 4294950784 }
  0x53   :  { %2582 = dma.done.wait [#allocation12], 8320  }
  0x54   :  { %2583 = vsyncadd [#allocation12], 4294958976  ;;  %v2679_v0 = vld [vmem:[#allocation2] sm:$0xff]  ;;  %v2681_v1 = vld [vmem:[#allocation2 + $0x8] sm:$0xff]  ;;  %s2597_s16 = smov [#allocation14]  }
  0x55   :  { %v232_v2 = vld [vmem:[#allocation8 + $0x1c0] sm:$0xff]  ;;  %v129_v3 = vadd.f32 %v2681_v1, %v2679_v0  ;;  %v132_v4 = vmul.f32 %v2679_v0, %v2679_v0  ;;  %v133_v5 = vmul.f32 %v2681_v1, %v2681_v1  ;;  %v233_v7 = vld [vmem:[#allocation8 + $0x1c8] sm:$0xff]  ;;  %s2039_s3 = sshll.u32 %s2597_s16, 4  ;;  %s2040_s3 = int_to_ptr.vmem [resolvable:$true] %s2039_s3 }
  0x56   :  { %v236_v6 = vld [vmem:[#allocation8 + $0x1e0] sm:$0xff]  ;;  %v237_v8 = vld [vmem:[#allocation8 + $0x1e8] sm:$0xff]  ;;  %s2556_s17 = scalar_lea.vmem %s2040_s3, 128  ;;  %p2561_p8 = scmp.lt.s32.totalorder %s2040_s3, %s2040_s3 }
  0x57   :  { %v2108_v9 = vcombine.high %v232_v2, %v236_v6  ;;  %v2110_v10 = vcombine.high %v233_v7, %v237_v8  ;;  %v2107_v11 = vcombine.low %v232_v2, %v236_v6  ;;  %v2109_v12 = vcombine.low %v233_v7, %v237_v8  ;;  %v224_v13 = vld [vmem:[#allocation8 + $0x180] sm:$0xff]  ;;  %v225_v15 = vld [vmem:[#allocation8 + $0x188] sm:$0xff]  ;;  %130 = vadd.xlane.f32.xlu0 %v129_v3  ;;  %p2557_p7 = scmp.ne.s32.totalorder %s2040_s3, %s2556_s17  ;;  %p2562_p9 = scmp.lt.s32.totalorder %s2556_s17, %s2556_s17 }
  0x58   :  { %v228_v14 = vld [vmem:[#allocation8 + $0x1a0] sm:$0xff]  ;;  %v134_v16 = vadd.f32 %v133_v5, %v132_v4  ;;  %v229_v18 = vld [vmem:[#allocation8 + $0x1a8] sm:$0xff] }
  0x59   :  { %v2100_v17 = vcombine.high %v224_v13, %v228_v14  ;;  %v216_v19 = vld [vmem:[#allocation8 + $0x140] sm:$0xff]  ;;  %986 = vmatprep.subr.bf16.mxu0 %v2108_v9  ;;  %1027 = vmatprep.subr.bf16.mxu1 %v2110_v10  ;;  %v2102_v21 = vcombine.high %v225_v15, %v229_v18  ;;  %v217_v22 = vld [vmem:[#allocation8 + $0x148] sm:$0xff]  ;;  %v2099_v24 = vcombine.low %v224_v13, %v228_v14  ;;  %p2563_p10 = por %p2562_p9, %p2561_p8 }
  0x5a   :  { %v220_v20 = vld [vmem:[#allocation8 + $0x160] sm:$0xff]  ;;  %v221_v23 = vld [vmem:[#allocation8 + $0x168] sm:$0xff]  ;;  %987 = vmatpush1.bf16.msra.mxu0 %v2107_v11  ;;  %1028 = vmatpush1.bf16.msra.mxu1 %v2109_v12  ;;  %v2101_v25 = vcombine.low %v225_v15, %v229_v18 }
  0x5b   :  { %988 = vmatprep.subr.bf16.mxu0 %v2100_v17  ;;  %1029 = vmatprep.subr.bf16.mxu1 %v2102_v21  ;;  %v2092_v26 = vcombine.high %v216_v19, %v220_v20  ;;  %v2094_v27 = vcombine.high %v217_v22, %v221_v23  ;;  %v208_v28 = vld [vmem:[#allocation8 + $0x100] sm:$0xff]  ;;  %v209_v30 = vld [vmem:[#allocation8 + $0x108] sm:$0xff]  ;;  %v2091_v32 = vcombine.low %v216_v19, %v220_v20  ;;  %p2564_p11 = pnand %p2563_p10, %p2557_p7 }
  0x5c   :  { %135 = vadd.xlane.f32.xlu0 %v134_v16  ;;  %v212_v29 = vld [vmem:[#allocation8 + $0x120] sm:$0xff]  ;;  %v213_v31 = vld [vmem:[#allocation8 + $0x128] sm:$0xff]  ;;  %v2093_v33 = vcombine.low %v217_v22, %v221_v23 }
  0x5d   :  { %v2084_v34 = vcombine.high %v208_v28, %v212_v29  ;;  %v2086_v35 = vcombine.high %v209_v30, %v213_v31  ;;  %v200_v36 = vld [vmem:[#allocation8 + $0xc0] sm:$0xff]  ;;  %v201_v38 = vld [vmem:[#allocation8 + $0xc8] sm:$0xff]  ;;  %v2083_v40 = vcombine.low %v208_v28, %v212_v29  ;;  %v2085_v41 = vcombine.low %v209_v30, %v213_v31 }
  0x5e   :  { %989 = vmatpush1.bf16.msra.mxu0 %v2099_v24  ;;  %1030 = vmatpush1.bf16.msra.mxu1 %v2101_v25  ;;  %v204_v37 = vld [vmem:[#allocation8 + $0xe0] sm:$0xff]  ;;  %v205_v39 = vld [vmem:[#allocation8 + $0xe8] sm:$0xff] }
  0x5f   :  { %990 = vmatprep.subr.bf16.mxu0 %v2092_v26  ;;  %1031 = vmatprep.subr.bf16.mxu1 %v2094_v27  ;;  %v192_v42 = vld [vmem:[#allocation8 + $0x80] sm:$0xff]  ;;  %v193_v44 = vld [vmem:[#allocation8 + $0x88] sm:$0xff]  ;;  %v2076_v46 = vcombine.high %v200_v36, %v204_v37  ;;  %v2078_v47 = vcombine.high %v201_v38, %v205_v39  ;;  %v2075_v48 = vcombine.low %v200_v36, %v204_v37 }
  0x60   :  { %v196_v43 = vld [vmem:[#allocation8 + $0xa0] sm:$0xff]  ;;  %v197_v45 = vld [vmem:[#allocation8 + $0xa8] sm:$0xff]  ;;  %v2077_v49 = vcombine.low %v201_v38, %v205_v39 }
  0x61   :  { %v184_v50 = vld [vmem:[#allocation8 + $0x40] sm:$0xff]  ;;  %v185_v52 = vld [vmem:[#allocation8 + $0x48] sm:$0xff]  ;;  %v2068_v54 = vcombine.high %v192_v42, %v196_v43  ;;  %v2070_v55 = vcombine.high %v193_v44, %v197_v45  ;;  %v2067_v56 = vcombine.low %v192_v42, %v196_v43  ;;  %v2069_v57 = vcombine.low %v193_v44, %v197_v45  ;;  %v2689_v42 = vld [vmem:[#allocation8 + $0x1d0] sm:$0xff] }
  0x62   :  { %991 = vmatpush1.bf16.msra.mxu0 %v2091_v32  ;;  %1032 = vmatpush1.bf16.msra.mxu1 %v2093_v33  ;;  %v188_v51 = vld [vmem:[#allocation8 + $0x60] sm:$0xff]  ;;  %v189_v53 = vld [vmem:[#allocation8 + $0x68] sm:$0xff]  ;;  %v2691_v43 = vld [vmem:[#allocation8 + $0x1f0] sm:$0xff] }
  0x63   :  { %992 = vmatprep.subr.bf16.mxu0 %v2084_v34  ;;  %1033 = vmatprep.subr.bf16.mxu1 %v2086_v35  ;;  %v176_v58 = vld [vmem:[#allocation8] sm:$0xff]  ;;  %v177_v60 = vld [vmem:[#allocation8 + $0x8] sm:$0xff]  ;;  %v2060_v62 = vcombine.high %v184_v50, %v188_v51  ;;  %v2062_v63 = vcombine.high %v185_v52, %v189_v53  ;;  %v2059_v2 = vcombine.low %v184_v50, %v188_v51  ;;  %v2693_v44 = vld [vmem:[#allocation8 + $0x1d8] sm:$0xff] }
  0x64   :  { %v180_v59 = vld [vmem:[#allocation8 + $0x20] sm:$0xff]  ;;  %v181_v61 = vld [vmem:[#allocation8 + $0x28] sm:$0xff]  ;;  %v2061_v3 = vcombine.low %v185_v52, %v189_v53  ;;  %v2695_v52 = vld [vmem:[#allocation8 + $0x1f8] sm:$0xff] }
  0x65   :  { %v2052_v4 = vcombine.high %v176_v58, %v180_v59  ;;  %v2054_v5 = vcombine.high %v177_v60, %v181_v61  ;;  %v296_v6 = vld [vmem:[#allocation8 + $0x3c0] sm:$0xff]  ;;  %v297_v8 = vld [vmem:[#allocation8 + $0x3c8] sm:$0xff]  ;;  %v2051_v10 = vcombine.low %v176_v58, %v180_v59  ;;  %v2053_v11 = vcombine.low %v177_v60, %v181_v61 }
  0x66   :  { %993 = vmatpush1.bf16.msra.mxu0 %v2083_v40  ;;  %1034 = vmatpush1.bf16.msra.mxu1 %v2085_v41  ;;  %v300_v7 = vld [vmem:[#allocation8 + $0x3e0] sm:$0xff]  ;;  %v301_v9 = vld [vmem:[#allocation8 + $0x3e8] sm:$0xff] }
  0x67   :  { %994 = vmatprep.subr.bf16.mxu0 %v2076_v46  ;;  %1035 = vmatprep.subr.bf16.mxu1 %v2078_v47  ;;  %v2172_v12 = vcombine.high %v296_v6, %v300_v7  ;;  %v2174_v13 = vcombine.high %v297_v8, %v301_v9  ;;  %v288_v14 = vld [vmem:[#allocation8 + $0x380] sm:$0xff]  ;;  %v289_v16 = vld [vmem:[#allocation8 + $0x388] sm:$0xff]  ;;  %v2171_v18 = vcombine.low %v296_v6, %v300_v7 }
  0x68   :  { %v292_v15 = vld [vmem:[#allocation8 + $0x3a0] sm:$0xff]  ;;  %v293_v17 = vld [vmem:[#allocation8 + $0x3a8] sm:$0xff]  ;;  %v2173_v19 = vcombine.low %v297_v8, %v301_v9 }
  0x69   :  { %v280_v20 = vld [vmem:[#allocation8 + $0x340] sm:$0xff]  ;;  %v281_v22 = vld [vmem:[#allocation8 + $0x348] sm:$0xff]  ;;  %v2164_v23 = vcombine.high %v288_v14, %v292_v15  ;;  %v2166_v24 = vcombine.high %v289_v16, %v293_v17  ;;  %v2163_v26 = vcombine.low %v288_v14, %v292_v15  ;;  %v2165_v27 = vcombine.low %v289_v16, %v293_v17 }
  0x6a   :  { %995 = vmatpush1.bf16.msra.mxu0 %v2075_v48  ;;  %1036 = vmatpush1.bf16.msra.mxu1 %v2077_v49  ;;  %v284_v21 = vld [vmem:[#allocation8 + $0x360] sm:$0xff]  ;;  %v285_v25 = vld [vmem:[#allocation8 + $0x368] sm:$0xff]  ;;  %v2112_v16 = vcombine.high %v2689_v42, %v2691_v43  ;;  %v2114_v17 = vcombine.high %v2693_v44, %v2695_v52 }
  0x6b   :  { %996 = vmatprep.subr.bf16.mxu0 %v2068_v54  ;;  %1037 = vmatprep.subr.bf16.mxu1 %v2070_v55  ;;  %v272_v28 = vld [vmem:[#allocation8 + $0x300] sm:$0xff]  ;;  %v273_v30 = vld [vmem:[#allocation8 + $0x308] sm:$0xff]  ;;  %v2156_v32 = vcombine.high %v280_v20, %v284_v21  ;;  %v2158_v33 = vcombine.high %v281_v22, %v285_v25  ;;  %v2155_v36 = vcombine.low %v280_v20, %v284_v21 }
  0x6c   :  { %v276_v29 = vld [vmem:[#allocation8 + $0x320] sm:$0xff]  ;;  %v277_v31 = vld [vmem:[#allocation8 + $0x328] sm:$0xff]  ;;  %v2157_v37 = vcombine.low %v281_v22, %v285_v25  ;;  %v2111_v54 = vcombine.low %v2689_v42, %v2691_v43  ;;  %v2113_v55 = vcombine.low %v2693_v44, %v2695_v52 }
  0x6d   :  { %v264_v34 = vld [vmem:[#allocation8 + $0x2c0] sm:$0xff]  ;;  %v265_v38 = vld [vmem:[#allocation8 + $0x2c8] sm:$0xff]  ;;  %v2148_v40 = vcombine.high %v272_v28, %v276_v29  ;;  %v2150_v41 = vcombine.high %v273_v30, %v277_v31  ;;  %v2147_v45 = vcombine.low %v272_v28, %v276_v29  ;;  %v2149_v46 = vcombine.low %v273_v30, %v277_v31  ;;  %v127_v30 = vld [vmem:[#allocation5] sm:$0x3] }
  0x6e   :  { %997 = vmatpush1.bf16.msra.mxu0 %v2067_v56  ;;  %1038 = vmatpush1.bf16.msra.mxu1 %v2069_v57  ;;  %v268_v35 = vld [vmem:[#allocation8 + $0x2e0] sm:$0xff]  ;;  %v269_v39 = vld [vmem:[#allocation8 + $0x2e8] sm:$0xff]  ;;  %v128_v31 = vld [vmem:[#allocation7] sm:$0x3] }
  0x6f   :  { %998 = vmatprep.subr.bf16.mxu0 %v2060_v62  ;;  %1039 = vmatprep.subr.bf16.mxu1 %v2062_v63  ;;  %v2140_v47 = vcombine.high %v264_v34, %v268_v35  ;;  %v256_v48 = vld [vmem:[#allocation8 + $0x280] sm:$0xff]  ;;  %v257_v50 = vld [vmem:[#allocation8 + $0x288] sm:$0xff]  ;;  %v2142_v53 = vcombine.high %v265_v38, %v269_v39  ;;  %v2139_v56 = vcombine.low %v264_v34, %v268_v35 }
  0x70   :  { %v260_v49 = vld [vmem:[#allocation8 + $0x2a0] sm:$0xff]  ;;  %v261_v51 = vld [vmem:[#allocation8 + $0x2a8] sm:$0xff]  ;;  %v2141_v57 = vcombine.low %v265_v38, %v269_v39 }
  0x71   :  { %v248_v58 = vld [vmem:[#allocation8 + $0x240] sm:$0xff]  ;;  %v249_v60 = vld [vmem:[#allocation8 + $0x248] sm:$0xff]  ;;  %v2132_v61 = vcombine.high %v256_v48, %v260_v49  ;;  %v2134_v62 = vcombine.high %v257_v50, %v261_v51 }
  0x72   :  { %999 = vmatpush1.bf16.msra.mxu0 %v2059_v2  ;;  %1040 = vmatpush1.bf16.msra.mxu1 %v2061_v3  ;;  %v252_v59 = vld [vmem:[#allocation8 + $0x260] sm:$0xff]  ;;  %v253_v63 = vld [vmem:[#allocation8 + $0x268] sm:$0xff]  ;;  %v2131_v2 = vcombine.low %v256_v48, %v260_v49  ;;  %v2133_v3 = vcombine.low %v257_v50, %v261_v51  ;;  %v226_v48 = vld [vmem:[#allocation8 + $0x190] sm:$0xff] }
  0x73   :  { %1000 = vmatprep.subr.bf16.mxu0 %v2052_v4  ;;  %1041 = vmatprep.subr.bf16.mxu1 %v2054_v5  ;;  %v240_v4 = vld [vmem:[#allocation8 + $0x200] sm:$0xff]  ;;  %v241_v6 = vld [vmem:[#allocation8 + $0x208] sm:$0xff]  ;;  %v2124_v7 = vcombine.high %v248_v58, %v252_v59  ;;  %v2126_v8 = vcombine.high %v249_v60, %v253_v63  ;;  %v230_v49 = vld [vmem:[#allocation8 + $0x1b0] sm:$0xff] }
  0x74   :  { %v244_v5 = vld [vmem:[#allocation8 + $0x220] sm:$0xff]  ;;  %v245_v9 = vld [vmem:[#allocation8 + $0x228] sm:$0xff]  ;;  %v231_v50 = vld [vmem:[#allocation8 + $0x1b8] sm:$0xff] }
  0x75   :  { %v2115_v14 = vcombine.low %v240_v4, %v244_v5  ;;  %v2117_v15 = vcombine.low %v241_v6, %v245_v9 }
  0x76   :  { %1001 = vmatpush1.bf16.msra.mxu0 %v2051_v10  ;;  %1042 = vmatpush1.bf16.msra.mxu1 %v2053_v11  ;;  %v2123_v10 = vcombine.low %v248_v58, %v252_v59  ;;  %v2125_v11 = vcombine.low %v249_v60, %v253_v63  ;;  %v222_v58 = vld [vmem:[#allocation8 + $0x170] sm:$0xff]  ;;  %v219_v59 = vld [vmem:[#allocation8 + $0x158] sm:$0xff] }
  0x77   :  { %1002 = vmatprep.subr.bf16.mxu0 %v2172_v12  ;;  %1043 = vmatprep.subr.bf16.mxu1 %v2174_v13  ;;  %v2116_v12 = vcombine.high %v240_v4, %v244_v5  ;;  %v2118_v13 = vcombine.high %v241_v6, %v245_v9  ;;  %v223_v60 = vld [vmem:[#allocation8 + $0x178] sm:$0xff]  ;;  %v214_v4 = vld [vmem:[#allocation8 + $0x130] sm:$0xff] }
  0x78   :  { %v211_v5 = vld [vmem:[#allocation8 + $0x118] sm:$0xff]  ;;  %v2097_v43 = vcombine.low %v219_v59, %v223_v60 }
  0x79   :  { %v215_v6 = vld [vmem:[#allocation8 + $0x138] sm:$0xff] }
  0x7a   :  { %1003 = vmatpush2.bf16.msra.mxu0 %v2171_v18  ;;  %1044 = vmatpush2.bf16.msra.mxu1 %v2173_v19  ;;  %v2090_v52 = vcombine.high %v211_v5, %v215_v6 }
  0x7b   :  { %1004 = vmatprep.subr.bf16.mxu0 %v2164_v23  ;;  %1045 = vmatprep.subr.bf16.mxu1 %v2166_v24 }
  0x7e   :  { %1005 = vmatpush2.bf16.msra.mxu0 %v2163_v26  ;;  %1046 = vmatpush2.bf16.msra.mxu1 %v2165_v27  ;;  %v149_v26 = vlaneseq }
  0x7f   :  { %1006 = vmatprep.subr.bf16.mxu0 %v2156_v32  ;;  %1047 = vmatprep.subr.bf16.mxu1 %v2158_v33 }
  0x80   :  { %v2705_v27 = vshrl.u32 %v149_v26, 7 }
  0x82   :  { %1007 = vmatpush2.bf16.msra.mxu0 %v2155_v36  ;;  %1048 = vmatpush2.bf16.msra.mxu1 %v2157_v37  ;;  %v2708_v28 = vsub.s32 1, %v2705_v27  ;;  %v2711_v29 = vsub.s32 0, %v2705_v27 }
  0x83   :  { %1008 = vmatprep.subr.bf16.mxu0 %v2148_v40  ;;  %1049 = vmatprep.subr.bf16.mxu1 %v2150_v41 }
  0x84   :  { %v156_v34 = vrot.slane %v127_v30, %v2708_v28  ;;  %v152_v35 = vrot.slane %v127_v30, %v2711_v29  ;;  %v169_v38 = vrot.slane %v128_v31, %v2708_v28  ;;  %v165_v40 = vrot.slane %v128_v31, %v2711_v29 }
  0x86   :  { %1009 = vmatpush2.bf16.msra.mxu0 %v2147_v45  ;;  %1050 = vmatpush2.bf16.msra.mxu1 %v2149_v46 }
  0x87   :  { %1010 = vmatprep.subr.bf16.mxu0 %v2140_v47  ;;  %1051 = vmatprep.subr.bf16.mxu1 %v2142_v53  ;;  %v218_v53 = vld [vmem:[#allocation8 + $0x150] sm:$0xff] }
  0x88   :  { %v2096_v63 = vcombine.high %v218_v53, %v222_v58  ;;  %v2095_v42 = vcombine.low %v218_v53, %v222_v58  ;;  %v291_v53 = vld [vmem:[#allocation8 + $0x398] sm:$0xff] }
  0x8a   :  { %1011 = vmatpush2.bf16.msra.mxu0 %v2139_v56  ;;  %1052 = vmatpush2.bf16.msra.mxu1 %v2141_v57  ;;  %v2104_v56 = vcombine.high %v226_v48, %v230_v49 }
  0x8b   :  { %1012 = vmatprep.subr.bf16.mxu0 %v2132_v61  ;;  %1053 = vmatprep.subr.bf16.mxu1 %v2134_v62  ;;  %v2103_v61 = vcombine.low %v226_v48, %v230_v49 }
  0x8e   :  { %1013 = vmatpush2.bf16.msra.mxu0 %v2131_v2  ;;  %1054 = vmatpush2.bf16.msra.mxu1 %v2133_v3  ;;  %v2098_v2 = vcombine.high %v219_v59, %v223_v60  ;;  %v210_v3 = vld [vmem:[#allocation8 + $0x110] sm:$0xff] }
  0x8f   :  { %1014 = vmatprep.subr.bf16.mxu0 %v2124_v7  ;;  %1055 = vmatprep.subr.bf16.mxu1 %v2126_v8  ;;  %v2088_v44 = vcombine.high %v210_v3, %v214_v4  ;;  %v203_v7 = vld [vmem:[#allocation8 + $0xd8] sm:$0xff]  ;;  %v2087_v9 = vcombine.low %v210_v3, %v214_v4 }
  0x90   :  { %v207_v8 = vld [vmem:[#allocation8 + $0xf8] sm:$0xff] }
  0x92   :  { %1015 = vmatpush2.bf16.msra.mxu0 %v2123_v10  ;;  %1056 = vmatpush2.bf16.msra.mxu1 %v2125_v11  ;;  %v2089_v10 = vcombine.low %v211_v5, %v215_v6 }
  0x93   :  { %1016 = vmatprep.subr.bf16.mxu0 %v2116_v12  ;;  %1057 = vmatprep.subr.bf16.mxu1 %v2118_v13  ;;  %v2082_v12 = vcombine.high %v203_v7, %v207_v8  ;;  %v194_v13 = vld [vmem:[#allocation8 + $0x90] sm:$0xff] }
  0x96   :  { %1017 = vmatpush2.bf16.msra.mxu0 %v2115_v14  ;;  %1058 = vmatpush2.bf16.msra.mxu1 %v2117_v15  ;;  %v198_v14 = vld [vmem:[#allocation8 + $0xb0] sm:$0xff]  ;;  %v195_v15 = vld [vmem:[#allocation8 + $0x98] sm:$0xff] }
  0x97   :  { %1068 = vmatprep.subr.bf16.mxu0 %v2112_v16  ;;  %1109 = vmatprep.subr.bf16.mxu1 %v2114_v17  ;;  %v199_v16 = vld [vmem:[#allocation8 + $0xb8] sm:$0xff] }
  0x98   :  { %v2073_v26 = vcombine.low %v195_v15, %v199_v16 }
  0xe0   :  { %v131_v18 = vpop.xlane.xlu0 %130 }
  0xe1   :  { %v137_v19 = vmul.f32 0.00390625, %v131_v18  ;;  %v2081_v18 = vcombine.low %v203_v7, %v207_v8 }
  0xe3   :  { %v139_v21 = vmul.f32 %v137_v19, %v137_v19  ;;  %v142_v32 = vsub.f32 %v2679_v0, %v137_v19  ;;  %v143_v33 = vsub.f32 %v2681_v1, %v137_v19  ;;  %v227_v0 = vld [vmem:[#allocation8 + $0x198] sm:$0xff]  ;;  %v2072_v19 = vcombine.high %v194_v13, %v198_v14 }
  0xe4   :  { %v2106_v57 = vcombine.high %v227_v0, %v231_v50  ;;  %v2105_v62 = vcombine.low %v227_v0, %v231_v50  ;;  %v290_v50 = vld [vmem:[#allocation8 + $0x390] sm:$0xff] }
  0xe5   :  { %v136_v20 = vpop.xlane.xlu0 %135 }
  0xe6   :  { %v138_v22 = vmul.f32 0.00390625, %v136_v20  ;;  %v2074_v20 = vcombine.high %v195_v15, %v199_v16 }
  0xe8   :  { %v140_v23 = vsub.f32 %v138_v22, %v139_v21  ;;  %v186_v21 = vld [vmem:[#allocation8 + $0x50] sm:$0xff] }
  0xe9   :  { %v190_v22 = vld [vmem:[#allocation8 + $0x70] sm:$0xff] }
  0xea   :  { %v141_v24 = vmax.f32 %v140_v23, 0.0  ;;  %v187_v23 = vld [vmem:[#allocation8 + $0x58] sm:$0xff]  ;;  %v2064_v30 = vcombine.high %v186_v21, %v190_v22 }
  0xec   :  { %v144_v25 = vadd.f32 1e-05, %v141_v24  ;;  %v191_v24 = vld [vmem:[#allocation8 + $0x78] sm:$0xff] }
  0xed   :  { %v2066_v31 = vcombine.high %v187_v23, %v191_v24 }
  0xee   :  { %2410 = vrsqrt.f32 %v144_v25  ;;  %v2071_v25 = vcombine.low %v194_v13, %v198_v14 }
  0xfb   :  { %v2411_v36 = vpop.eup %2410 }
  0xfc   :  { %v147_v37 = vmul.f32 %v2411_v36, %v143_v33  ;;  %v146_v39 = vmul.f32 %v2411_v36, %v142_v32  ;;  %v178_v32 = vld [vmem:[#allocation8 + $0x10] sm:$0xff]  ;;  %v2063_v36 = vcombine.low %v186_v21, %v190_v22 }
  0xfd   :  { %v182_v33 = vld [vmem:[#allocation8 + $0x30] sm:$0xff] }
  0xfe   :  { %v160_v41 = vmul.f32 %v156_v34, %v147_v37  ;;  %v159_v45 = vmul.f32 %v152_v35, %v146_v39  ;;  %v179_v34 = vld [vmem:[#allocation8 + $0x18] sm:$0xff]  ;;  %v2065_v37 = vcombine.low %v187_v23, %v191_v24 }
  0xff   :  { %v183_v35 = vld [vmem:[#allocation8 + $0x38] sm:$0xff] }
 0x100   :  { %v173_v46 = vadd.f32 %v169_v38, %v160_v41  ;;  %v172_v47 = vadd.f32 %v165_v40, %v159_v45  ;;  %v2056_v38 = vcombine.high %v178_v32, %v182_v33  ;;  %v2058_v39 = vcombine.high %v179_v34, %v183_v35  ;;  %v298_v40 = vld [vmem:[#allocation8 + $0x3d0] sm:$0xff]  ;;  %v299_v45 = vld [vmem:[#allocation8 + $0x3d8] sm:$0xff] }
 0x101   :  { %v302_v41 = vld [vmem:[#allocation8 + $0x3f0] sm:$0xff]  ;;  %v2057_v48 = vcombine.low %v179_v34, %v183_v35 }
 0x102   :  { %v175_v1 = vpack.c.bf16 %v173_v46, %v173_v46  ;;  %v2719_v51 = vpack.c.bf16 %v172_v47, %v172_v47  ;;  %v303_v46 = vld [vmem:[#allocation8 + $0x3f8] sm:$0xff]  ;;  %v2055_v47 = vcombine.low %v178_v32, %v182_v33  ;;  %v2176_v49 = vcombine.high %v298_v40, %v302_v41 }
 0x103   :  { %v2178_v0 = vcombine.high %v299_v45, %v303_v46  ;;  %v2177_v58 = vcombine.low %v299_v45, %v303_v46 }
 0x104   :  { %1018 = vmatprep.mubr.bf16.mxu0 %v175_v1  ;;  %1059 = vmatprep.mubr.bf16.mxu1 %v175_v1 }
 0x105   :  { %1019 = vmatmul.mubr.bf16.vlgmr.msra.gmra.mxu0 %v2719_v51  ;;  %1060 = vmatmul.mubr.bf16.vlgmr.msra.gmra.mxu1 %v2719_v51 }
 0x106   :  { %1069 = vmatpush1.bf16.msra.mxu0 %v2111_v54  ;;  %1110 = vmatpush1.bf16.msra.mxu1 %v2113_v55  ;;  %v202_v54 = vld [vmem:[#allocation8 + $0xd0] sm:$0xff] }
 0x107   :  { %1100 = vmatprep.mubr.bf16.mxu0 %v175_v1  ;;  %1141 = vmatprep.mubr.bf16.mxu1 %v175_v1  ;;  %v206_v55 = vld [vmem:[#allocation8 + $0xf0] sm:$0xff] }
 0x108   :  { %1070 = vmatprep.subr.bf16.mxu0 %v2104_v56  ;;  %1111 = vmatprep.subr.bf16.mxu1 %v2106_v57  ;;  %v2080_v11 = vcombine.high %v202_v54, %v206_v55  ;;  %v2079_v17 = vcombine.low %v202_v54, %v206_v55  ;;  %v294_v1 = vld [vmem:[#allocation8 + $0x3b0] sm:$0xff]  ;;  %v295_v56 = vld [vmem:[#allocation8 + $0x3b8] sm:$0xff]  ;;  %v2175_v57 = vcombine.low %v298_v40, %v302_v41 }
 0x109   :  { %v2168_v59 = vcombine.high %v290_v50, %v294_v1  ;;  %v2170_v60 = vcombine.high %v291_v53, %v295_v56  ;;  %v2167_v3 = vcombine.low %v290_v50, %v294_v1  ;;  %v2169_v4 = vcombine.low %v291_v53, %v295_v56 }
 0x10a   :  { %1071 = vmatpush1.bf16.msra.mxu0 %v2103_v61  ;;  %1112 = vmatpush1.bf16.msra.mxu1 %v2105_v62  ;;  %v282_v61 = vld [vmem:[#allocation8 + $0x350] sm:$0xff] }
 0x10b   :  { %1072 = vmatprep.subr.bf16.mxu0 %v2096_v63  ;;  %1113 = vmatprep.subr.bf16.mxu1 %v2098_v2  ;;  %v286_v62 = vld [vmem:[#allocation8 + $0x370] sm:$0xff]  ;;  %v283_v63 = vld [vmem:[#allocation8 + $0x358] sm:$0xff] }
 0x10c   :  { %v287_v2 = vld [vmem:[#allocation8 + $0x378] sm:$0xff]  ;;  %v2160_v5 = vcombine.high %v282_v61, %v286_v62  ;;  %v2159_v54 = vcombine.low %v282_v61, %v286_v62  ;;  %v2734_v62 = vsub.s32 2, %v2705_v27 }
 0x10d   :  { %v2162_v6 = vcombine.high %v283_v63, %v287_v2  ;;  %v2161_v55 = vcombine.low %v283_v63, %v287_v2 }
 0x10e   :  { %1073 = vmatpush1.bf16.msra.mxu0 %v2095_v42  ;;  %1114 = vmatpush1.bf16.msra.mxu1 %v2097_v43  ;;  %v274_v42 = vld [vmem:[#allocation8 + $0x310] sm:$0xff] }
 0x10f   :  { %1074 = vmatprep.subr.bf16.mxu0 %v2088_v44  ;;  %1115 = vmatprep.subr.bf16.mxu1 %v2090_v52  ;;  %v278_v43 = vld [vmem:[#allocation8 + $0x330] sm:$0xff]  ;;  %v275_v44 = vld [vmem:[#allocation8 + $0x318] sm:$0xff] }
 0x110   :  { %v279_v52 = vld [vmem:[#allocation8 + $0x338] sm:$0xff]  ;;  %v2152_v7 = vcombine.high %v274_v42, %v278_v43  ;;  %v2151_v13 = vcombine.low %v274_v42, %v278_v43 }
 0x111   :  { %v2154_v8 = vcombine.high %v275_v44, %v279_v52  ;;  %v2153_v14 = vcombine.low %v275_v44, %v279_v52  ;;  %v2754_v44 = vsub.s32 4, %v2705_v27 }
 0x112   :  { %1075 = vmatpush1.bf16.msra.mxu0 %v2087_v9  ;;  %1116 = vmatpush1.bf16.msra.mxu1 %v2089_v10  ;;  %v266_v9 = vld [vmem:[#allocation8 + $0x2d0] sm:$0xff] }
 0x113   :  { %1076 = vmatprep.subr.bf16.mxu0 %v2080_v11  ;;  %1117 = vmatprep.subr.bf16.mxu1 %v2082_v12  ;;  %v270_v10 = vld [vmem:[#allocation8 + $0x2f0] sm:$0xff]  ;;  %v267_v11 = vld [vmem:[#allocation8 + $0x2d8] sm:$0xff] }
 0x114   :  { %v271_v12 = vld [vmem:[#allocation8 + $0x2f8] sm:$0xff]  ;;  %v2144_v15 = vcombine.high %v266_v9, %v270_v10  ;;  %v2143_v21 = vcombine.low %v266_v9, %v270_v10 }
 0x115   :  { %v2146_v16 = vcombine.high %v267_v11, %v271_v12  ;;  %v2145_v22 = vcombine.low %v267_v11, %v271_v12  ;;  %v2769_v12 = vsub.s32 7, %v2705_v27 }
 0x116   :  { %1077 = vmatpush1.bf16.msra.mxu0 %v2079_v17  ;;  %1118 = vmatpush1.bf16.msra.mxu1 %v2081_v18  ;;  %v258_v17 = vld [vmem:[#allocation8 + $0x290] sm:$0xff] }
 0x117   :  { %1078 = vmatprep.subr.bf16.mxu0 %v2072_v19  ;;  %1119 = vmatprep.subr.bf16.mxu1 %v2074_v20  ;;  %v262_v18 = vld [vmem:[#allocation8 + $0x2b0] sm:$0xff]  ;;  %v259_v19 = vld [vmem:[#allocation8 + $0x298] sm:$0xff] }
 0x118   :  { %v263_v20 = vld [vmem:[#allocation8 + $0x2b8] sm:$0xff]  ;;  %v2136_v23 = vcombine.high %v258_v17, %v262_v18  ;;  %v2135_v32 = vcombine.low %v258_v17, %v262_v18 }
 0x119   :  { %v2138_v24 = vcombine.high %v259_v19, %v263_v20  ;;  %v2137_v33 = vcombine.low %v259_v19, %v263_v20 }
 0x11a   :  { %1079 = vmatpush1.bf16.msra.mxu0 %v2071_v25  ;;  %1120 = vmatpush1.bf16.msra.mxu1 %v2073_v26  ;;  %v250_v25 = vld [vmem:[#allocation8 + $0x250] sm:$0xff] }
 0x11b   :  { %1080 = vmatprep.subr.bf16.mxu0 %v2064_v30  ;;  %1121 = vmatprep.subr.bf16.mxu1 %v2066_v31  ;;  %v254_v26 = vld [vmem:[#allocation8 + $0x270] sm:$0xff]  ;;  %v251_v30 = vld [vmem:[#allocation8 + $0x258] sm:$0xff] }
 0x11c   :  { %v255_v31 = vld [vmem:[#allocation8 + $0x278] sm:$0xff]  ;;  %v2128_v34 = vcombine.high %v250_v25, %v254_v26  ;;  %v2127_v40 = vcombine.low %v250_v25, %v254_v26 }
 0x11d   :  { %v2130_v35 = vcombine.high %v251_v30, %v255_v31  ;;  %v2129_v41 = vcombine.low %v251_v30, %v255_v31 }
 0x11e   :  { %1081 = vmatpush1.bf16.msra.mxu0 %v2063_v36  ;;  %1122 = vmatpush1.bf16.msra.mxu1 %v2065_v37  ;;  %v242_v36 = vld [vmem:[#allocation8 + $0x210] sm:$0xff] }
 0x11f   :  { %1082 = vmatprep.subr.bf16.mxu0 %v2056_v38  ;;  %1123 = vmatprep.subr.bf16.mxu1 %v2058_v39  ;;  %v246_v37 = vld [vmem:[#allocation8 + $0x230] sm:$0xff]  ;;  %v243_v38 = vld [vmem:[#allocation8 + $0x218] sm:$0xff] }
 0x120   :  { %v247_v39 = vld [vmem:[#allocation8 + $0x238] sm:$0xff]  ;;  %v2120_v45 = vcombine.high %v242_v36, %v246_v37 }
 0x121   :  { %v2122_v46 = vcombine.high %v243_v38, %v247_v39 }
 0x122   :  { %1083 = vmatpush1.bf16.msra.mxu0 %v2055_v47  ;;  %1124 = vmatpush1.bf16.msra.mxu1 %v2057_v48  ;;  %v2119_v47 = vcombine.low %v242_v36, %v246_v37  ;;  %v2121_v48 = vcombine.low %v243_v38, %v247_v39 }
 0x123   :  { %1084 = vmatprep.subr.bf16.mxu0 %v2176_v49  ;;  %1125 = vmatprep.subr.bf16.mxu1 %v2178_v0 }
 0x126   :  { %1085 = vmatpush2.bf16.msra.mxu0 %v2175_v57  ;;  %1126 = vmatpush2.bf16.msra.mxu1 %v2177_v58 }
 0x127   :  { %1086 = vmatprep.subr.bf16.mxu0 %v2168_v59  ;;  %1127 = vmatprep.subr.bf16.mxu1 %v2170_v60  ;;  %v304_v59 = vld [vmem:[#allocation10] sm:$0xff] }
 0x128   :  { %v313_v60 = vrot.slane %v304_v59, %v2708_v28  ;;  %v309_v61 = vrot.slane %v304_v59, %v2711_v29  ;;  %v325_v10 = vrot.slane %v304_v59, %v2754_v44 }
 0x12a   :  { %1087 = vmatpush2.bf16.msra.mxu0 %v2167_v3  ;;  %1128 = vmatpush2.bf16.msra.mxu1 %v2169_v4  ;;  %v2742_v3 = vsub.s32 3, %v2705_v27 }
 0x12b   :  { %1088 = vmatprep.subr.bf16.mxu0 %v2160_v5  ;;  %1129 = vmatprep.subr.bf16.mxu1 %v2162_v6 }
 0x12c   :  { %v321_v42 = vrot.slane %v304_v59, %v2742_v3 }
 0x12e   :  { %1089 = vmatpush2.bf16.msra.mxu0 %v2159_v54  ;;  %1130 = vmatpush2.bf16.msra.mxu1 %v2161_v55  ;;  %v2757_v54 = vsub.s32 6, %v2705_v27  ;;  %v2760_v55 = vsub.s32 5, %v2705_v27 }
 0x12f   :  { %1090 = vmatprep.subr.bf16.mxu0 %v2152_v7  ;;  %1131 = vmatprep.subr.bf16.mxu1 %v2154_v8 }
 0x132   :  { %1091 = vmatpush2.bf16.msra.mxu0 %v2151_v13  ;;  %1132 = vmatpush2.bf16.msra.mxu1 %v2153_v14  ;;  %v333_v13 = vrot.slane %v304_v59, %v2757_v54  ;;  %v329_v14 = vrot.slane %v304_v59, %v2760_v55 }
 0x133   :  { %1092 = vmatprep.subr.bf16.mxu0 %v2144_v15  ;;  %1133 = vmatprep.subr.bf16.mxu1 %v2146_v16 }
 0x136   :  { %1093 = vmatpush2.bf16.msra.mxu0 %v2143_v21  ;;  %1134 = vmatpush2.bf16.msra.mxu1 %v2145_v22  ;;  %v337_v22 = vrot.slane %v304_v59, %v2769_v12 }
 0x137   :  { %1094 = vmatprep.subr.bf16.mxu0 %v2136_v23  ;;  %1135 = vmatprep.subr.bf16.mxu1 %v2138_v24 }
 0x13a   :  { %1095 = vmatpush2.bf16.msra.mxu0 %v2135_v32  ;;  %1136 = vmatpush2.bf16.msra.mxu1 %v2137_v33 }
 0x13b   :  { %1096 = vmatprep.subr.bf16.mxu0 %v2128_v34  ;;  %1137 = vmatprep.subr.bf16.mxu1 %v2130_v35 }
 0x13e   :  { %1097 = vmatpush2.bf16.msra.mxu0 %v2127_v40  ;;  %1138 = vmatpush2.bf16.msra.mxu1 %v2129_v41 }
 0x13f   :  { %1098 = vmatprep.subr.bf16.mxu0 %v2120_v45  ;;  %1139 = vmatprep.subr.bf16.mxu1 %v2122_v46 }
 0x142   :  { %1099 = vmatpush2.bf16.msra.mxu0 %v2119_v47  ;;  %1140 = vmatpush2.bf16.msra.mxu1 %v2121_v48  ;;  %v2346_v48 = vld [vmem:[#allocation13 + $0x78] sm:$0xff]  }
 0x143   :  { %2246 = vmatprep.subr.bf16.mxu0 %v2346_v48 }
 0x145   :  { %1101 = vmatmul.mubr.bf16.vlgmr.msra.gmra.mxu0 %v2719_v51  ;;  %1142 = vmatmul.mubr.bf16.vlgmr.msra.gmra.mxu1 %v2719_v51  ;;  %v317_v51 = vrot.slane %v304_v59, %v2734_v62  ;;  %v2355_v59 = vld [vmem:[#allocation13 + $0xe8] sm:$0xff]  }
 0x1c5   :  { %v1020_v49 = vpop.f32.mrf.mxu0  ;;  %v1061_v0 = vpop.f32.mrf.mxu1 }
 0x1c6   :  { %v2738_v2 = vadd.f32 %v1020_v49, %v309_v61  ;;  %v2748_v6 = vadd.f32 %v1061_v0, %v317_v51  ;;  %v2347_v49 = vld [vmem:[#allocation13 + $0xf8] sm:$0xff]   ;;  %v2357_v61 = vld [vmem:[#allocation13 + $0xa8] sm:$0xff]   ;;  %v2358_v51 = vld [vmem:[#allocation13 + $0x60] sm:$0xff]  }
 0x1c7   :  { %v1022_v50 = vpop.f32.mrf.mxu0  ;;  %v1063_v1 = vpop.f32.mrf.mxu1  ;;  %v2348_v0 = vld [vmem:[#allocation13 + $0x38] sm:$0xff]   ;;  %2268 = vmatprep.subr.bf16.mxu1 %v2347_v49 }
 0x1c8   :  { %v2736_v63 = vadd.f32 %v1022_v50, %v313_v60  ;;  %v1161_v5 = vmul.f32 %v2738_v2, %v2738_v2  ;;  %v1163_v7 = vmul.f32 %v2748_v6, %v2748_v6  ;;  %v2764_v8 = vadd.f32 %v1063_v1, %v321_v42  ;;  %v2349_v50 = vld [vmem:[#allocation13 + $0xb8] sm:$0xff]   ;;  %2247 = vmatpush3.bf16.msra.mxu0 %v2348_v0  ;;  %v2350_v1 = vld [vmem:[#allocation13 + $0x70] sm:$0xff]   ;;  %v2356_v60 = vld [vmem:[#allocation13 + $0x28] sm:$0xff]  }
 0x1c9   :  { %v1024_v53 = vpop.f32.mrf.mxu0  ;;  %v1065_v56 = vpop.f32.mrf.mxu1  ;;  %2269 = vmatpush3.bf16.msra.mxu1 %v2349_v50  ;;  %2248 = vmatprep.subr.bf16.mxu0 %v2350_v1  ;;  %v2361_v42 = vld [vmem:[#allocation13 + $0xa0] sm:$0xff]  }
 0x1ca   :  { %v1162_v4 = vmul.f32 %v2736_v63, %v2736_v63  ;;  %v1152_v43 = vadd.f32 %v2736_v63, %v2738_v2  ;;  %v1164_v15 = vmul.f32 %v2764_v8, %v2764_v8  ;;  %v2351_v53 = vld [vmem:[#allocation13 + $0xf0] sm:$0xff]  }
 0x1cb   :  { %v1025_v57 = vpop.f32.mrf.mxu0  ;;  %v1066_v58 = vpop.f32.mrf.mxu1  ;;  %v2352_v56 = vld [vmem:[#allocation13 + $0x30] sm:$0xff]   ;;  %2270 = vmatprep.subr.bf16.mxu1 %v2351_v53 }
 0x1cc   :  { %v1169_v52 = vadd.f32 %v1162_v4, %v1161_v5  ;;  %v1153_v9 = vadd.f32 %v1152_v43, %v2748_v6  ;;  %v2353_v57 = vld [vmem:[#allocation13 + $0xb0] sm:$0xff]   ;;  %2249 = vmatpush3.bf16.msra.mxu0 %v2352_v56  ;;  %v2354_v58 = vld [vmem:[#allocation13 + $0x68] sm:$0xff]   ;;  %v2359_v4 = vld [vmem:[#allocation13 + $0xe0] sm:$0xff]  }
 0x1cd   :  { %2271 = vmatpush3.bf16.msra.mxu1 %v2353_v57  ;;  %2250 = vmatprep.subr.bf16.mxu0 %v2354_v58  ;;  %v2360_v5 = vld [vmem:[#allocation13 + $0x20] sm:$0xff]   ;;  %v2362_v43 = vld [vmem:[#allocation13 + $0x58] sm:$0xff]  }
 0x1ce   :  { %v1170_v11 = vadd.f32 %v1169_v52, %v1163_v7  ;;  %v1154_v18 = vadd.f32 %v1153_v9, %v2764_v8  ;;  %2272 = vmatprep.subr.bf16.mxu1 %v2355_v59  ;;  %v2363_v52 = vld [vmem:[#allocation13 + $0xd8] sm:$0xff]  }
 0x1cf   :  { %v2364_v7 = vld [vmem:[#allocation13 + $0x18] sm:$0xff]  }
 0x1d0   :  { %v1171_v20 = vadd.f32 %v1170_v11, %v1164_v15  ;;  %2251 = vmatpush3.bf16.msra.mxu0 %v2356_v60  ;;  %v2365_v9 = vld [vmem:[#allocation13 + $0x98] sm:$0xff]   ;;  %v2367_v11 = vld [vmem:[#allocation13 + $0xd0] sm:$0xff]   ;;  %v2370_v15 = vld [vmem:[#allocation13 + $0x48] sm:$0xff]  }
 0x1d1   :  { %2273 = vmatpush3.bf16.msra.mxu1 %v2357_v61  ;;  %2252 = vmatprep.subr.bf16.mxu0 %v2358_v51 }
 0x1d2   :  { %2274 = vmatprep.subr.bf16.mxu1 %v2359_v4 }
 0x1d4   :  { %2253 = vmatpush3.bf16.msra.mxu0 %v2360_v5 }
 0x1d5   :  { %2275 = vmatpush3.bf16.msra.mxu1 %v2361_v42  ;;  %2254 = vmatprep.subr.bf16.mxu0 %v2362_v43 }
 0x1d6   :  { %2276 = vmatprep.subr.bf16.mxu1 %v2363_v52 }
 0x1d8   :  { %2255 = vmatpush3.bf16.msra.mxu0 %v2364_v7 }
 0x1d9   :  { %2277 = vmatpush3.bf16.msra.mxu1 %v2365_v9 }
 0x1da   :  { %2278 = vmatprep.subr.bf16.mxu1 %v2367_v11 }
 0x205   :  { %v1102_v16 = vpop.f32.mrf.mxu0  ;;  %v1143_v17 = vpop.f32.mrf.mxu1 }
 0x206   :  { %v2776_v19 = vadd.f32 %v1102_v16, %v325_v10  ;;  %v2782_v25 = vadd.f32 %v1143_v17, %v333_v13  ;;  %v2366_v10 = vld [vmem:[#allocation13 + $0x50] sm:$0xff]   ;;  %v2371_v16 = vld [vmem:[#allocation13 + $0xc8] sm:$0xff]  }
 0x207   :  { %v1104_v21 = vpop.f32.mrf.mxu0  ;;  %v1145_v23 = vpop.f32.mrf.mxu1  ;;  %v2368_v13 = vld [vmem:[#allocation13 + $0x10] sm:$0xff]   ;;  %2256 = vmatprep.subr.bf16.mxu0 %v2366_v10  ;;  %v2372_v17 = vld [vmem:[#allocation13 + $0x8] sm:$0xff]  }
 0x208   :  { %v1155_v27 = vadd.f32 %v1154_v18, %v2776_v19  ;;  %v1165_v24 = vmul.f32 %v2776_v19, %v2776_v19  ;;  %v2784_v26 = vadd.f32 %v1104_v21, %v329_v14  ;;  %v1167_v37 = vmul.f32 %v2782_v25, %v2782_v25  ;;  %v2369_v14 = vld [vmem:[#allocation13 + $0x90] sm:$0xff]   ;;  %2257 = vmatpush3.bf16.msra.mxu0 %v2368_v13  ;;  %v2373_v18 = vld [vmem:[#allocation13 + $0x88] sm:$0xff]   ;;  %v2375_v21 = vld [vmem:[#allocation13 + $0xc0] sm:$0xff]  }
 0x209   :  { %v1106_v30 = vpop.f32.mrf.mxu0  ;;  %v1147_v31 = vpop.f32.mrf.mxu1  ;;  %v2791_v38 = vadd.f32 %v1145_v23, %v337_v22  ;;  %2279 = vmatpush3.bf16.msra.mxu1 %v2369_v14  ;;  %2258 = vmatprep.subr.bf16.mxu0 %v2370_v15  ;;  %v2376_v22 = vld [vmem:[#allocation13] sm:$0xff]  }
 0x20a   :  { %v1172_v32 = vadd.f32 %v1171_v20, %v1165_v24  ;;  %v1166_v33 = vmul.f32 %v2784_v26, %v2784_v26  ;;  %v1156_v34 = vadd.f32 %v1155_v27, %v2784_v26  ;;  %2280 = vmatprep.subr.bf16.mxu1 %v2371_v16  ;;  %v2374_v20 = vld [vmem:[#allocation13 + $0x40] sm:$0xff]   ;;  %v2378_v27 = vld [vmem:[#allocation13 + $0x178] sm:$0xff]  }
 0x20b   :  { %v1107_v35 = vpop.f32.mrf.mxu0  ;;  %v1148_v36 = vpop.f32.mrf.mxu1  ;;  %v1168_v46 = vmul.f32 %v2791_v38, %v2791_v38  ;;  %v2377_v23 = vld [vmem:[#allocation13 + $0x80] sm:$0xff]   ;;  %v2379_v24 = vld [vmem:[#allocation13 + $0x1f8] sm:$0xff]  }
 0x20c   :  { %v1157_v39 = vadd.f32 %v1156_v34, %v2782_v25  ;;  %v1173_v40 = vadd.f32 %v1172_v32, %v1166_v33  ;;  %2259 = vmatpush3.bf16.msra.mxu0 %v2372_v17 }
 0x20d   :  { %2281 = vmatpush3.bf16.msra.mxu1 %v2373_v18  ;;  %2260 = vmatprep.subr.bf16.mxu0 %v2374_v20 }
 0x20e   :  { %v1158_v41 = vadd.f32 %v1157_v39, %v2791_v38  ;;  %v1174_v45 = vadd.f32 %v1173_v40, %v1167_v37  ;;  %2282 = vmatprep.subr.bf16.mxu1 %v2375_v21  ;;  %v2804_v39 = vld [vmem:[%s2883_s5] sm:$0xff] }
 0x20f   :  { %v2806_v40 = vld [vmem:[#allocation11] sm:$0xff]  ;;  %v1205_v49 = vrot.slane %v2804_v39, %v2711_v29  ;;  %v1225_v0 = vrot.slane %v2804_v39, %v2760_v55  ;;  %v1233_v50 = vrot.slane %v2804_v39, %v2769_v12 }
 0x210   :  { %1159 = vadd.xlane.f32.xlu1 %v1158_v41  ;;  %v1175_v47 = vadd.f32 %v1174_v45, %v1168_v46  ;;  %2261 = vmatpush3.bf16.msra.mxu0 %v2376_v22  ;;  %v1213_v41 = vrot.slane %v2804_v39, %v2734_v62  ;;  %v1262_v45 = vrot.slane %v2806_v40, %v2734_v62 }
 0x211   :  { %2283 = vmatpush3.bf16.msra.mxu1 %v2377_v23  ;;  %2290 = vmatprep.subr.bf16.mxu0 %v2378_v27  ;;  %v1209_v46 = vrot.slane %v2804_v39, %v2708_v28  ;;  %v1258_v48 = vrot.slane %v2806_v40, %v2708_v28  ;;  %v1266_v57 = vrot.slane %v2806_v40, %v2742_v3 }
 0x212   :  { %2312 = vmatprep.subr.bf16.mxu1 %v2379_v24  ;;  %v1254_v58 = vrot.slane %v2806_v40, %v2711_v29 }
 0x214   :  { %1176 = vadd.xlane.f32.xlu1 %v1175_v47  ;;  %v1217_v47 = vrot.slane %v2804_v39, %v2742_v3  ;;  %v1274_v3 = vrot.slane %v2806_v40, %v2760_v55 }
 0x299   :  { %v1160_v30 = vpop.xlane.xlu1 %1159 }
 0x29a   :  { %v2797_v31 = vmul.f32 0.0009765625, %v1160_v30 }
 0x29c   :  { %v1180_v33 = vmul.f32 %v2797_v31, %v2797_v31  ;;  %v1184_v62 = vsub.f32 %v2736_v63, %v2797_v31  ;;  %v1186_v1 = vsub.f32 %v2764_v8, %v2797_v31  ;;  %v1183_v53 = vsub.f32 %v2738_v2, %v2797_v31 }
 0x29d   :  { %v1177_v32 = vpop.xlane.xlu1 %1176  ;;  %v1185_v28 = vsub.f32 %v2748_v6, %v2797_v31  ;;  %v1188_v63 = vsub.f32 %v2784_v26, %v2797_v31  ;;  %v1190_v8 = vsub.f32 %v2791_v38, %v2797_v31  ;;  %v1282_v26 = vrot.slane %v2806_v40, %v2769_v12 }
 0x29e   :  { %v1179_v34 = vmul.f32 0.0009765625, %v1177_v32 }
 0x2a0   :  { %v1181_v35 = vsub.f32 %v1179_v34, %v1180_v33  ;;  %v2380_v33 = vld [vmem:[#allocation13 + $0x138] sm:$0xff]  }
 0x2a1   :  { %v2381_v34 = vld [vmem:[#allocation13 + $0x1b8] sm:$0xff]  }
 0x2a2   :  { %v1182_v36 = vmax.f32 %v1181_v35, 0.0 }
 0x2a4   :  { %v1191_v37 = vadd.f32 1e-05, %v1182_v36  ;;  %v2382_v36 = vld [vmem:[#allocation13 + $0x170] sm:$0xff]  }
 0x2a6   :  { %2412 = vrsqrt.f32 %v1191_v37  ;;  %v2383_v37 = vld [vmem:[#allocation13 + $0x1f0] sm:$0xff]  }
 0x2b3   :  { %v2832_v56 = vpop.eup %2412 }
 0x2b4   :  { %v1194_v59 = vmul.f32 %v2832_v56, %v1184_v62  ;;  %v1196_v2 = vmul.f32 %v2832_v56, %v1186_v1  ;;  %v1193_v6 = vmul.f32 %v2832_v56, %v1183_v53  ;;  %v1195_v60 = vmul.f32 %v2832_v56, %v1185_v28  ;;  %v2390_v62 = vld [vmem:[#allocation13 + $0x160] sm:$0xff]  }
 0x2b5   :  { %v1198_v61 = vmul.f32 %v2832_v56, %v1188_v63  ;;  %v1200_v29 = vmul.f32 %v2832_v56, %v1190_v8  ;;  %v2391_v1 = vld [vmem:[#allocation13 + $0x1e0] sm:$0xff]   ;;  %v1187_v53 = vsub.f32 %v2776_v19, %v2797_v31  ;;  %v1189_v28 = vsub.f32 %v2782_v25, %v2797_v31  ;;  %v2396_v31 = vld [vmem:[#allocation13 + $0x118] sm:$0xff]  }
 0x2b6   :  { %v1243_v51 = vmul.f32 %v1209_v46, %v1194_v59  ;;  %v1245_v38 = vmul.f32 %v1217_v47, %v1196_v2  ;;  %v1242_v4 = vmul.f32 %v1205_v49, %v1193_v6  ;;  %v1244_v5 = vmul.f32 %v1213_v41, %v1195_v60  ;;  %v2384_v46 = vld [vmem:[#allocation13 + $0x130] sm:$0xff]   ;;  %v2387_v49 = vld [vmem:[#allocation13 + $0x1e8] sm:$0xff]   ;;  %v2393_v63 = vld [vmem:[#allocation13 + $0x1a0] sm:$0xff]  }
 0x2b7   :  { %v1247_v42 = vmul.f32 %v1225_v0, %v1198_v61  ;;  %v1249_v43 = vmul.f32 %v1233_v50, %v1200_v29  ;;  %v2385_v47 = vld [vmem:[#allocation13 + $0x1b0] sm:$0xff]   ;;  %v2388_v0 = vld [vmem:[#allocation13 + $0x128] sm:$0xff]   ;;  %v1229_v8 = vrot.slane %v2804_v39, %v2757_v54  ;;  %v2394_v59 = vld [vmem:[#allocation13 + $0x158] sm:$0xff]   ;;  %v1197_v6 = vmul.f32 %v2832_v56, %v1187_v53 }
 0x2b8   :  { %v1292_v52 = vadd.f32 %v1258_v48, %v1243_v51  ;;  %v1294_v7 = vadd.f32 %v1266_v57, %v1245_v38  ;;  %v1291_v9 = vadd.f32 %v1254_v58, %v1242_v4  ;;  %v1293_v10 = vadd.f32 %v1262_v45, %v1244_v5  ;;  %v2386_v48 = vld [vmem:[#allocation13 + $0x168] sm:$0xff]   ;;  %v2392_v58 = vld [vmem:[#allocation13 + $0x120] sm:$0xff]   ;;  %v2395_v2 = vld [vmem:[#allocation13 + $0x1d8] sm:$0xff]  }
 0x2b9   :  { %v1296_v11 = vadd.f32 %v1274_v3, %v1247_v42  ;;  %v1298_v13 = vadd.f32 %v1282_v26, %v1249_v43  ;;  %v2389_v50 = vld [vmem:[#allocation13 + $0x1a8] sm:$0xff]   ;;  %v1221_v57 = vrot.slane %v2804_v39, %v2754_v44  ;;  %v1199_v19 = vmul.f32 %v2832_v56, %v1189_v28  ;;  %v2397_v60 = vld [vmem:[#allocation13 + $0x198] sm:$0xff]   ;;  %v2398_v39 = vld [vmem:[#allocation13 + $0x150] sm:$0xff]  }
 0x2ba   :  { %v1300_v14 = vmul.f32 0.2, %v1292_v52  ;;  %v1302_v15 = vmul.f32 0.2, %v1294_v7  ;;  %v1299_v55 = vmul.f32 0.2, %v1291_v9  ;;  %v1270_v25 = vrot.slane %v2806_v40, %v2754_v44 }
 0x2bb   :  { %v1301_v16 = vmul.f32 0.2, %v1293_v10  ;;  %v1304_v17 = vmul.f32 0.2, %v1296_v11  ;;  %v1306_v18 = vmul.f32 0.2, %v1298_v13  ;;  %v1278_v61 = vrot.slane %v2806_v40, %v2757_v54 }
 0x2bc   :  { %v1308_v20 = vmax.f32 %v1292_v52, %v1300_v14  ;;  %v1310_v12 = vmax.f32 %v1294_v7, %v1302_v15  ;;  %v1307_v21 = vmax.f32 %v1291_v9, %v1299_v55  ;;  %v2399_v3 = vld [vmem:[#allocation13 + $0x1d0] sm:$0xff]   ;;  %v1246_v29 = vmul.f32 %v1221_v57, %v1197_v6  ;;  %v2402_v44 = vld [vmem:[#allocation13 + $0x148] sm:$0xff]   ;;  %v2406_v40 = vld [vmem:[#allocation13 + $0x140] sm:$0xff]  }
 0x2bd   :  { %v1309_v22 = vmax.f32 %v1293_v10, %v1301_v16  ;;  %v1312_v23 = vmax.f32 %v1296_v11, %v1304_v17  ;;  %v1314_v27 = vmax.f32 %v1298_v13, %v1306_v18  ;;  %v1248_v26 = vmul.f32 %v1229_v8, %v1199_v19  ;;  %v2400_v51 = vld [vmem:[#allocation13 + $0x110] sm:$0xff]   ;;  %v2403_v38 = vld [vmem:[#allocation13 + $0x1c8] sm:$0xff]   ;;  %v2407_v43 = vld [vmem:[#allocation13 + $0x1c0] sm:$0xff]  }
 0x2be   :  { %v1316_v24 = vpack.c.bf16 %v1308_v20, %v1308_v20  ;;  %v1318_v30 = vpack.c.bf16 %v1310_v12, %v1310_v12  ;;  %v1315_v32 = vpack.c.bf16 %v1307_v21, %v1307_v21  ;;  %v2401_v56 = vld [vmem:[#allocation13 + $0x190] sm:$0xff]   ;;  %v1295_v4 = vadd.f32 %v1270_v25, %v1246_v29  ;;  %v2404_v42 = vld [vmem:[#allocation13 + $0x108] sm:$0xff]   ;;  %v2408_v9 = vld [vmem:[#allocation13 + $0x100] sm:$0xff]  }
 0x2bf   :  { %v1317_v35 = vpack.c.bf16 %v1309_v22, %v1309_v22  ;;  %v1320_v41 = vpack.c.bf16 %v1312_v23, %v1312_v23  ;;  %v1322_v45 = vpack.c.bf16 %v1314_v27, %v1314_v27  ;;  %v1297_v5 = vadd.f32 %v1278_v61, %v1248_v26  ;;  %v2405_v54 = vld [vmem:[#allocation13 + $0x188] sm:$0xff]   ;;  %v2409_v10 = vld [vmem:[#allocation13 + $0x180] sm:$0xff]   ;;  %v2179_v27 = vld [vmem:[%s2886_s8] ss:$0 sm:$0xff] }
 0x2c0   :  { %1874 = vmatprep.mubr.bf16.mxu0 %v1316_v24  ;;  %1914 = vmatprep.mubr.bf16.mxu1 %v1318_v30  ;;  %v1303_v52 = vmul.f32 0.2, %v1295_v4  ;;  %v2244_v6 = vld [vmem:[%s2887_s9] ss:$0 sm:$0xff] }
 0x2c1   :  { %1875 = vmatmul.mubr.bf16.vlgmr.msra.gmra.mxu0 %v1315_v32  ;;  %1915 = vmatmul.mubr.bf16.vlgmr.msra.gmra.mxu1 %v1317_v35  ;;  %v1305_v7 = vmul.f32 0.2, %v1297_v5  ;;  %v2245_v25 = vld [vmem:[%s2888_s10] ss:$0 sm:$0xff] }
 0x2c2   :  { %2291 = vmatpush3.bf16.msra.mxu0 %v2380_v33  ;;  %2313 = vmatpush3.bf16.msra.mxu1 %v2381_v34  ;;  %v1311_v11 = vmax.f32 %v1295_v4, %v1303_v52 }
 0x2c3   :  { %1954 = vmatprep.mubr.bf16.mxu0 %v1320_v41  ;;  %1994 = vmatprep.mubr.bf16.mxu1 %v1322_v45  ;;  %v1313_v13 = vmax.f32 %v1297_v5, %v1305_v7 }
 0x2c4   :  { %2292 = vmatprep.subr.bf16.mxu0 %v2382_v36  ;;  %2314 = vmatprep.subr.bf16.mxu1 %v2383_v37  ;;  %v1319_v14 = vpack.c.bf16 %v1311_v11, %v1311_v11 }
 0x2c5   :  { %v1321_v15 = vpack.c.bf16 %v1313_v13, %v1313_v13 }
 0x2c6   :  { %2293 = vmatpush3.bf16.msra.mxu0 %v2384_v46  ;;  %2315 = vmatpush3.bf16.msra.mxu1 %v2385_v47 }
 0x2c7   :  { %2294 = vmatprep.subr.bf16.mxu0 %v2386_v48  ;;  %2316 = vmatprep.subr.bf16.mxu1 %v2387_v49 }
 0x2ca   :  { %2295 = vmatpush3.bf16.msra.mxu0 %v2388_v0  ;;  %2317 = vmatpush3.bf16.msra.mxu1 %v2389_v50 }
 0x2cb   :  { %2296 = vmatprep.subr.bf16.mxu0 %v2390_v62  ;;  %2318 = vmatprep.subr.bf16.mxu1 %v2391_v1 }
 0x2ce   :  { %2297 = vmatpush3.bf16.msra.mxu0 %v2392_v58  ;;  %2319 = vmatpush3.bf16.msra.mxu1 %v2393_v63 }
 0x2cf   :  { %2298 = vmatprep.subr.bf16.mxu0 %v2394_v59  ;;  %2320 = vmatprep.subr.bf16.mxu1 %v2395_v2 }
 0x2d2   :  { %2299 = vmatpush3.bf16.msra.mxu0 %v2396_v31  ;;  %2321 = vmatpush3.bf16.msra.mxu1 %v2397_v60 }
 0x2d3   :  { %2300 = vmatprep.subr.bf16.mxu0 %v2398_v39  ;;  %2322 = vmatprep.subr.bf16.mxu1 %v2399_v3 }
 0x2d6   :  { %2301 = vmatpush3.bf16.msra.mxu0 %v2400_v51  ;;  %2323 = vmatpush3.bf16.msra.mxu1 %v2401_v56 }
 0x2d7   :  { %2302 = vmatprep.subr.bf16.mxu0 %v2402_v44  ;;  %2324 = vmatprep.subr.bf16.mxu1 %v2403_v38 }
 0x2da   :  { %2303 = vmatpush3.bf16.msra.mxu0 %v2404_v42  ;;  %2325 = vmatpush3.bf16.msra.mxu1 %v2405_v54 }
 0x2db   :  { %2304 = vmatprep.subr.bf16.mxu0 %v2406_v40  ;;  %2326 = vmatprep.subr.bf16.mxu1 %v2407_v43 }
 0x2de   :  { %2305 = vmatpush3.bf16.msra.mxu0 %v2408_v9  ;;  %2327 = vmatpush3.bf16.msra.mxu1 %v2409_v10 }
 0x2e1   :  { %1955 = vmatmul.mubr.bf16.vlgmr.msra.gmra.mxu0 %v1319_v14  ;;  %1995 = vmatmul.mubr.bf16.vlgmr.msra.gmra.mxu1 %v1321_v15 }
 0x381   :  { %v2262_v55 = vpop.f32.mrf.mxu0  ;;  %v2284_v16 = vpop.f32.mrf.mxu1 }
 0x383   :  { %v2263_v17 = vpop.f32.mrf.mxu0  ;;  %v2285_v18 = vpop.f32.mrf.mxu1 }
 0x384   :  { %v2264_v23 = vadd.f32 %v2263_v17, %v2262_v55  ;;  %v2286_v33 = vadd.f32 %v2285_v18, %v2284_v16 }
 0x385   :  { %v2265_v20 = vpop.f32.mrf.mxu0  ;;  %v2287_v12 = vpop.f32.mrf.mxu1 }
 0x386   :  { %v1877_v24 = vadd.f32 %v2264_v23, %v2179_v27 }
 0x387   :  { %v2266_v21 = vpop.f32.mrf.mxu0  ;;  %v2288_v22 = vpop.f32.mrf.mxu1 }
 0x388   :  { %v1917_v36 = vadd.f32 %v2286_v33, %v1877_v24 }
 0x3a1   :  { %v2306_v30 = vpop.f32.mrf.mxu0  ;;  %v2328_v32 = vpop.f32.mrf.mxu1 }
 0x3a3   :  { %v2307_v34 = vpop.f32.mrf.mxu0  ;;  %v2329_v35 = vpop.f32.mrf.mxu1 }
 0x3a4   :  { %v2308_v37 = vadd.f32 %v2307_v34, %v2306_v30  ;;  %v2330_v47 = vadd.f32 %v2329_v35, %v2328_v32 }
 0x3a5   :  { %v2309_v41 = vpop.f32.mrf.mxu0  ;;  %v2331_v45 = vpop.f32.mrf.mxu1 }
 0x3a6   :  { %v1957_v46 = vadd.f32 %v2308_v37, %v1917_v36 }
 0x3a7   :  { %v2310_v48 = vpop.f32.mrf.mxu0  ;;  %v2332_v49 = vpop.f32.mrf.mxu1 }
 0x3a8   :  { %v1997_v0 = vadd.f32 %v2330_v47, %v1957_v46 }
 0x3aa   :  { %2004 = vadd.xlane.f32.xlu0 %v1997_v0  ;;  %v2006_v50 = vmul.f32 %v1997_v0, %v1997_v0 }
 0x3ac   :  { %2007 = vadd.xlane.f32.xlu1 %v2006_v50 }
 0x433   :  { %v2005_v62 = vpop.xlane.xlu0 %2004 }
 0x434   :  { %v2009_v1 = vmul.f32 0.0078125, %v2005_v62 }
 0x435   :  { %v2008_v53 = vpop.xlane.xlu1 %2007 }
 0x436   :  { %v2011_v28 = vmul.f32 %v2009_v1, %v2009_v1  ;;  %v2010_v57 = vmul.f32 0.0078125, %v2008_v53  ;;  %v2014_v59 = vsub.f32 %v1997_v0, %v2009_v1 }
 0x438   :  { %v2012_v58 = vsub.f32 %v2010_v57, %v2011_v28 }
 0x43a   :  { %v2013_v63 = vmax.f32 %v2012_v58, 0.0 }
 0x43c   :  { %v2015_v8 = vadd.f32 1e-05, %v2013_v63 }
 0x43e   :  { %2414 = vrsqrt.f32 %v2015_v8 }
 0x44b   :  { %v2415_v2 = vpop.eup %2414 }
 0x44c   :  { %v2017_v19 = vmul.f32 %v2415_v2, %v2014_v59 }
 0x44e   :  { %v2024_v31 = vmul.f32 %v2244_v6, %v2017_v19 }
 0x450   :  { %v2031_v60 = vadd.f32 %v2245_v25, %v2024_v31 }
 0x452   :  { %2032 = vst [vmem:[#allocation14] sm:$0xff] %v2031_v60 }
 0x453   :  { %2567 = shalt.err (!%p2564_p11)
}
 0x454   :  { %2042 = dma.vmem_to_hbm [thread:$0]  %s2040_s3, 128, %s2889_s11, [#allocation4]  }
 0x455   :  { %2584 = dma.done.wait [#allocation4], 128  }
 0x456   :  { %2585 = vsyncadd [#allocation4], 4294967168 }
 0x457   :  { %2046 = vsyncpa [#allocation3], 1 }
 0x458   :  { %2047 = vsyncpa [#allocation6], 1 }
 0x459   :  { %2048 = vsyncpa [#allocation9], 1 }
 0x45a   :  { %2049 = vsyncpa [#allocation12], 1 }
 0x45b   :  { %2050 = vsyncpa [#allocation4], 1 }

</bundles_post_ra>
